<compile_context>
chip_gen: v6e
topology: v6e:2x2x1
jax: 0.10.0
libtpu: 0.0.40
codegen_flags: <defaults>
</compile_context>

<pallas_src>
import functools

import jax
import jax.numpy as jnp
from jax.experimental import pallas as pl
from jax.experimental.pallas import tpu as pltpu


# ---------------------------------------------------------------------------
# Pallas kernel:
#   y   = raw * scale + shift
#   out = relu(y * sigmoid(W2 @ relu(W1 @ avgpool(y))) + res)
# Block layout: (B, Cp, HWp) with channels on sublanes, flattened spatial on
# lanes (padded to multiples of 8 / 128).
# ---------------------------------------------------------------------------
def _bn_se_res_relu_kernel(y_ref, r_ref, sc_ref, sh_ref, w1_ref, w2_ref,
                           o_ref, *, inv_hw):
    y_raw = y_ref[...]                                   # (B, Cp, HWp) f32
    scale = sc_ref[...]                                  # (Cp, 1)
    shift = sh_ref[...]                                  # (Cp, 1)

    # Folded inference BatchNorm (per output channel).
    y = y_raw * scale[None, :, :] + shift[None, :, :]    # (B, Cp, HWp)

    # Squeeze: global average pool over spatial lanes.  Computed from the raw
    # sum so zero lane-padding stays exact:
    #   mean(scale*raw + shift) == mean(raw)*scale + shift.
    pooled = (jnp.sum(y_raw, axis=-1) * inv_hw) * scale[:, 0][None, :] \
             + shift[:, 0][None, :]                      # (B, Cp)

    # Excitation: two 1x1 convs.  FLOPs ~ 2*B*C*Cr, negligible, so keep them
    # on the VPU + XLU (broadcast multiply + lane reduce) instead of feeding
    # the MXU a 1-column RHS.
    w1 = w1_ref[...]                                     # (Cr, Cp)
    w2 = w2_ref[...]                                     # (Cp, Cr)
    s1 = jnp.maximum(jnp.sum(pooled[:, None, :] * w1[None, :, :], axis=-1), 0.0)
    s2 = jax.nn.sigmoid(jnp.sum(s1[:, None, :] * w2[None, :, :], axis=-1))

    # Scale, add residual, final ReLU -- single pass over the resident block.
    out = jnp.maximum(y * s2[:, :, None] + r_ref[...], 0.0)
    o_ref[...] = out.astype(o_ref.dtype)


def _pad_axis_to(x, axis, multiple):
    pad = (-x.shape[axis]) % multiple
    if pad == 0:
        return x
    widths = [(0, 0)] * x.ndim
    widths[axis] = (0, pad)
    return jnp.pad(x, widths)


def _pick_batch_block(n, bytes_per_sample, target_bytes=4 * 1024 * 1024):
    """Largest divisor of n giving ~target-sized blocks, keeping >=2 grid steps."""
    b = int(max(1, min(n, target_bytes // max(bytes_per_sample, 1))))
    while n % b:
        b -= 1
    if n >= 2 and n // b < 2:
        # v7x has 2 TensorCores per chip: keep at least 2 parallel grid steps.
        b = max(d for d in range(1, n // 2 + 1) if n % d == 0)
    return b


def fused_bn_se_residual_relu(y_raw, residual, bn_scale, bn_shift, w1, w2):
    """Fused BN(scale/shift) + SE scale + residual add + ReLU.
    y_raw, residual: (N, C, H, W) f32;  bn_scale, bn_shift: (C,);
    w1: (Cr, C);  w2: (C, Cr)."""
    N, C, H, W = y_raw.shape
    HW = H * W
    Cr = w1.shape[0]

    # Lane-dense layout guard: HW -> multiple of 128 (lanes), C -> multiple of
    # 8 (sublanes).  Zero padding is exact (see kernel comments); padded
    # rows/lanes are sliced off below.
    y3 = _pad_axis_to(_pad_axis_to(y_raw.reshape(N, C, HW), 2, 128), 1, 8)
    r3 = _pad_axis_to(_pad_axis_to(residual.reshape(N, C, HW), 2, 128), 1, 8)
    Cp, HWp = y3.shape[1], y3.shape[2]

    scp = _pad_axis_to(bn_scale.reshape(C, 1), 0, 8)     # (Cp, 1)
    shp = _pad_axis_to(bn_shift.reshape(C, 1), 0, 8)     # (Cp, 1)
    w1p = _pad_axis_to(w1, 1, 8)                         # (Cr, Cp)
    w2p = _pad_axis_to(w2, 0, 8)                         # (Cp, Cr)

    bytes_per_sample = Cp * HWp * y3.dtype.itemsize
    B = _pick_batch_block(N, bytes_per_sample)
    block_bytes = B * bytes_per_sample
    const_bytes = 4 * (scp.size + shp.size + w1p.size + w2p.size)
    # y, residual, out double-buffered + constants + slack; clamp so the
    # request also fits v7x's 64 MiB VMEM with headroom.
    vmem_need = 6 * block_bytes + 2 * const_bytes + (1 << 20)
    vmem_limit = int(min(max(vmem_need, 32 * 1024 * 1024), 48 * 1024 * 1024))

    kernel = functools.partial(_bn_se_res_relu_kernel, inv_hw=1.0 / HW)

    def call(single_buffer_consts):
        ckw = ({"pipeline_mode": pl.Buffered(1)} if single_buffer_consts
               else {})
        grid_spec = pltpu.PrefetchScalarGridSpec(
            num_scalar_prefetch=0,
            grid=(N // B,),
            in_specs=[
                pl.BlockSpec((B, Cp, HWp), lambda n: (n, 0, 0)),
                pl.BlockSpec((B, Cp, HWp), lambda n: (n, 0, 0)),
                pl.BlockSpec((Cp, 1), lambda n: (0, 0), **ckw),
                pl.BlockSpec((Cp, 1), lambda n: (0, 0), **ckw),
                pl.BlockSpec((Cr, Cp), lambda n: (0, 0), **ckw),
                pl.BlockSpec((Cp, Cr), lambda n: (0, 0), **ckw),
            ],
            out_specs=pl.BlockSpec((B, Cp, HWp), lambda n: (n, 0, 0)),
        )
        return pl.pallas_call(
            kernel,
            out_shape=jax.ShapeDtypeStruct((N, Cp, HWp), y3.dtype),
            grid_spec=grid_spec,
            compiler_params=pltpu.CompilerParams(
                dimension_semantics=("parallel",),
                vmem_limit_bytes=vmem_limit),
        )(y3, r3, scp, shp, w1p, w2p)

    try:
        out3 = call(True)
    except Exception:
        # Fallback if single-buffered constants (pl.Buffered(1)) are rejected.
        out3 = call(False)

    return out3[:, :C, :HW].reshape(N, C, H, W)


# ---------------------------------------------------------------------------
# BasicBlcok forward (wrapper).
# ---------------------------------------------------------------------------
def _conv3x3(x, w, stride, dilation):
    # PyTorch Conv2d(kernel_size=3, padding=1, dilation=d, bias=False).
    return jax.lax.conv_general_dilated(
        x, w,
        window_strides=(stride, stride),
        padding=((1, 1), (1, 1)),
        rhs_dilation=(dilation, dilation),
        dimension_numbers=("NCHW", "OIHW", "NCHW"))


def _bn(x, scale, shift):
    # Inference BatchNorm folded to per-channel scale/shift.
    return x * scale[None, :, None, None] + shift[None, :, None, None]


def basic_block_forward(x, params, *, stride=1, dilation=1):
    """BasicBlcok(in_dim=out_dim, norm='bn', activation='relu', se=True,
    downsample=None) forward, NCHW."""
    # TODO(synk): the two 3x3 convs + folded bn1 are evaluated with XLA
    # conv_general_dilated; bn2 + SE + residual-add + ReLU is the hand-written
    # Pallas kernel.
    y = _conv3x3(x, params["conv1_w"], stride, dilation)
    y = jnp.maximum(_bn(y, params["bn1_scale"], params["bn1_shift"]), 0.0)
    y = _conv3x3(y, params["conv2_w"], 1, dilation)
    residual = x  # TODO(synk): downsample is an arbitrary module; demo uses None.
    return fused_bn_se_residual_relu(
        y, residual,
        params["bn2_scale"], params["bn2_shift"],
        params["se_w1"], params["se_w2"])


def basic_block_ref(x, params, *, stride=1, dilation=1):
    """Pure-JAX reference matching the PyTorch BasicBlcok forward."""
    y = _conv3x3(x, params["conv1_w"], stride, dilation)
    y = jnp.maximum(_bn(y, params["bn1_scale"], params["bn1_shift"]), 0.0)
    y = _conv3x3(y, params["conv2_w"], 1, dilation)
    y = _bn(y, params["bn2_scale"], params["bn2_shift"])
    pooled = jnp.mean(y, axis=(2, 3))                       # (N, C)
    s1 = jnp.maximum(pooled @ params["se_w1"].T, 0.0)       # (N, C//r)
    s2 = jax.nn.sigmoid(s1 @ params["se_w2"].T)             # (N, C)
    y = y * s2[:, :, None, None]
    return jnp.maximum(y + x, 0.0)


if __name__ == "__main__":
    # BasicBlcok(in_dim=32, out_dim=32, norm='bn', se=True), SE reduction=16.
    N, C, H, W = 2, 32, 16, 16
    reduction = 16
    Cr = C // reduction
    eps = 1e-5

    key = jax.random.PRNGKey(0)
    ks = jax.random.split(key, 13)
    x = jax.random.normal(ks[0], (N, C, H, W), dtype=jnp.float32)

    conv1_w = jax.random.normal(ks[1], (C, C, 3, 3), dtype=jnp.float32) * 0.05
    conv2_w = jax.random.normal(ks[2], (C, C, 3, 3), dtype=jnp.float32) * 0.05

    def bn_params(kg, kb, km, kv):
        gamma = 1.0 + 0.1 * jax.random.normal(kg, (C,), dtype=jnp.float32)
        beta = 0.1 * jax.random.normal(kb, (C,), dtype=jnp.float32)
        mean = 0.1 * jax.random.normal(km, (C,), dtype=jnp.float32)
        var = jax.random.uniform(kv, (C,), dtype=jnp.float32,
                                 minval=0.5, maxval=1.5)
        scale = gamma / jnp.sqrt(var + eps)
        return scale, beta - mean * scale

    bn1_scale, bn1_shift = bn_params(ks[3], ks[4], ks[5], ks[6])
    bn2_scale, bn2_shift = bn_params(ks[7], ks[8], ks[9], ks[10])

    # SE 1x1-conv weights (no bias), squeezed to 2-D.
    se_w1 = jax.random.normal(ks[11], (Cr, C), dtype=jnp.float32) * 0.1
    se_w2 = jax.random.normal(ks[12], (C, Cr), dtype=jnp.float32) * 0.1

    params = dict(conv1_w=conv1_w, conv2_w=conv2_w,
                  bn1_scale=bn1_scale, bn1_shift=bn1_shift,
                  bn2_scale=bn2_scale, bn2_shift=bn2_shift,
                  se_w1=se_w1, se_w2=se_w2)

    out = basic_block_forward(x, params)
    out = jax.block_until_ready(out)

    ref = basic_block_ref(x, params)
    assert out.shape == (N, C, H, W)
    assert jnp.allclose(out, ref, atol=1e-5, rtol=1e-5), "mismatch vs reference"

    print("KERNEL_OK")
</pallas_src>

<mosaic_0001>
module attributes {stable_mosaic.version = 11 : i64} {
  func.func @_bn_se_res_relu_kernel(%arg0: i32, %arg1: memref<1x32x256xf32, #tpu.memory_space<vmem>>, %arg2: memref<1x32x256xf32, #tpu.memory_space<vmem>>, %arg3: memref<32x1xf32, #tpu.memory_space<vmem>>, %arg4: memref<32x1xf32, #tpu.memory_space<vmem>>, %arg5: memref<2x32xf32, #tpu.memory_space<vmem>>, %arg6: memref<32x2xf32, #tpu.memory_space<vmem>>, %arg7: memref<1x32x256xf32, #tpu.memory_space<vmem>>) attributes {dimension_semantics = [#tpu.dimension_semantics<parallel>], iteration_bounds = array<i64: 2>, scalar_prefetch = 0 : i64, scratch_operands = 0 : i64, tpu.core_type = #tpu.core_type<tc>, window_params = [{transform_indices = @transform_0, window_bounds = array<i64: 1, 32, 256>}, {transform_indices = @transform_1, window_bounds = array<i64: 1, 32, 256>}, {pipeline_mode = #tpu.pipeline_mode<synchronous>, transform_indices = @transform_2, window_bounds = array<i64: 32, 1>}, {pipeline_mode = #tpu.pipeline_mode<synchronous>, transform_indices = @transform_3, window_bounds = array<i64: 32, 1>}, {pipeline_mode = #tpu.pipeline_mode<synchronous>, transform_indices = @transform_4, window_bounds = array<i64: 2, 32>}, {pipeline_mode = #tpu.pipeline_mode<synchronous>, transform_indices = @transform_5, window_bounds = array<i64: 32, 2>}, {transform_indices = @transform_6, window_bounds = array<i64: 1, 32, 256>}]} {
    %c0 = arith.constant 0 : index
    %c0_0 = arith.constant 0 : index
    %c0_1 = arith.constant 0 : index
    %0 = vector.load %arg1[%c0, %c0_0, %c0_1] : memref<1x32x256xf32, #tpu.memory_space<vmem>>, vector<1x32x256xf32>
    %c0_2 = arith.constant 0 : index
    %c0_3 = arith.constant 0 : index
    %1 = vector.load %arg3[%c0_2, %c0_3] : memref<32x1xf32, #tpu.memory_space<vmem>>, vector<32x1xf32>
    %c0_4 = arith.constant 0 : index
    %c0_5 = arith.constant 0 : index
    %2 = vector.load %arg4[%c0_4, %c0_5] : memref<32x1xf32, #tpu.memory_space<vmem>>, vector<32x1xf32>
    %3 = vector.shape_cast %1 : vector<32x1xf32> to vector<1x32x1xf32>
    %4 = vector.broadcast %3 : vector<1x32x1xf32> to vector<1x32x256xf32>
    %5 = arith.mulf %0, %4 : vector<1x32x256xf32>
    %6 = vector.shape_cast %2 : vector<32x1xf32> to vector<1x32x1xf32>
    %7 = vector.broadcast %6 : vector<1x32x1xf32> to vector<1x32x256xf32>
    %8 = arith.addf %5, %7 : vector<1x32x256xf32>
    %cst = arith.constant dense<0.000000e+00> : vector<1x32xf32>
    %9 = vector.multi_reduction <add>, %0, %cst [2] : vector<1x32x256xf32> to vector<1x32xf32>
    %cst_6 = arith.constant 3.906250e-03 : f32
    %10 = vector.broadcast %cst_6 : f32 to vector<1x32xf32>
    %11 = arith.mulf %9, %10 : vector<1x32xf32>
    %12 = vector.shape_cast %1 : vector<32x1xf32> to vector<32xf32>
    %13 = vector.shape_cast %12 : vector<32xf32> to vector<1x32xf32>
    %14 = arith.mulf %11, %13 : vector<1x32xf32>
    %15 = vector.shape_cast %2 : vector<32x1xf32> to vector<32xf32>
    %16 = vector.shape_cast %15 : vector<32xf32> to vector<1x32xf32>
    %17 = arith.addf %14, %16 : vector<1x32xf32>
    %c0_7 = arith.constant 0 : index
    %c0_8 = arith.constant 0 : index
    %18 = vector.load %arg5[%c0_7, %c0_8] : memref<2x32xf32, #tpu.memory_space<vmem>>, vector<2x32xf32>
    %c0_9 = arith.constant 0 : index
    %c0_10 = arith.constant 0 : index
    %19 = vector.load %arg6[%c0_9, %c0_10] : memref<32x2xf32, #tpu.memory_space<vmem>>, vector<32x2xf32>
    %20 = vector.shape_cast %17 : vector<1x32xf32> to vector<1x1x32xf32>
    %21 = vector.shape_cast %18 : vector<2x32xf32> to vector<1x2x32xf32>
    %22 = vector.broadcast %20 : vector<1x1x32xf32> to vector<1x2x32xf32>
    %23 = arith.mulf %22, %21 : vector<1x2x32xf32>
    %cst_11 = arith.constant dense<0.000000e+00> : vector<1x2xf32>
    %24 = vector.multi_reduction <add>, %23, %cst_11 [2] : vector<1x2x32xf32> to vector<1x2xf32>
    %cst_12 = arith.constant 0.000000e+00 : f32
    %25 = vector.broadcast %cst_12 : f32 to vector<1x2xf32>
    %26 = arith.maximumf %24, %25 : vector<1x2xf32>
    %27 = vector.shape_cast %26 : vector<1x2xf32> to vector<1x1x2xf32>
    %28 = vector.shape_cast %19 : vector<32x2xf32> to vector<1x32x2xf32>
    %29 = vector.broadcast %27 : vector<1x1x2xf32> to vector<1x32x2xf32>
    %30 = arith.mulf %29, %28 : vector<1x32x2xf32>
    %cst_13 = arith.constant dense<0.000000e+00> : vector<1x32xf32>
    %31 = vector.multi_reduction <add>, %30, %cst_13 [2] : vector<1x32x2xf32> to vector<1x32xf32>
    %32 = arith.negf %31 : vector<1x32xf32>
    %33 = math.exp %32 : vector<1x32xf32>
    %cst_14 = arith.constant 1.000000e+00 : f32
    %34 = vector.broadcast %cst_14 : f32 to vector<1x32xf32>
    %35 = arith.addf %34, %33 : vector<1x32xf32>
    %36 = arith.divf %34, %35 : vector<1x32xf32>
    %37 = vector.shape_cast %36 : vector<1x32xf32> to vector<1x32x1xf32>
    %38 = vector.broadcast %37 : vector<1x32x1xf32> to vector<1x32x256xf32>
    %39 = arith.mulf %8, %38 : vector<1x32x256xf32>
    %c0_15 = arith.constant 0 : index
    %c0_16 = arith.constant 0 : index
    %c0_17 = arith.constant 0 : index
    %40 = vector.load %arg2[%c0_15, %c0_16, %c0_17] : memref<1x32x256xf32, #tpu.memory_space<vmem>>, vector<1x32x256xf32>
    %41 = arith.addf %39, %40 : vector<1x32x256xf32>
    %cst_18 = arith.constant 0.000000e+00 : f32
    %42 = vector.broadcast %cst_18 : f32 to vector<1x32x256xf32>
    %43 = arith.maximumf %41, %42 : vector<1x32x256xf32>
    %c0_19 = arith.constant 0 : index
    %c0_20 = arith.constant 0 : index
    %c0_21 = arith.constant 0 : index
    %44 = vector.load %arg7[%c0_19, %c0_20, %c0_21] : memref<1x32x256xf32, #tpu.memory_space<vmem>>, vector<1x32x256xf32>
    tpu.vector_store %arg7[%c0_19, %c0_20, %c0_21], %43 {strides = array<i32>} : memref<1x32x256xf32, #tpu.memory_space<vmem>>, vector<1x32x256xf32>,
    return
  }
  func.func @transform_0(%arg0: i32) -> (i32, i32, i32) {
    %c0_i32 = arith.constant 0 : i32
    %c0_i32_0 = arith.constant 0 : i32
    %c0_i32_1 = arith.constant 0 : i32
    return %arg0, %c0_i32, %c0_i32_0 : i32, i32, i32
  }
  func.func @transform_1(%arg0: i32) -> (i32, i32, i32) {
    %c0_i32 = arith.constant 0 : i32
    %c0_i32_0 = arith.constant 0 : i32
    %c0_i32_1 = arith.constant 0 : i32
    return %arg0, %c0_i32, %c0_i32_0 : i32, i32, i32
  }
  func.func @transform_2(%arg0: i32) -> (i32, i32) {
    %c0_i32 = arith.constant 0 : i32
    %c0_i32_0 = arith.constant 0 : i32
    %c0_i32_1 = arith.constant 0 : i32
    return %c0_i32, %c0_i32_0 : i32, i32
  }
  func.func @transform_3(%arg0: i32) -> (i32, i32) {
    %c0_i32 = arith.constant 0 : i32
    %c0_i32_0 = arith.constant 0 : i32
    %c0_i32_1 = arith.constant 0 : i32
    return %c0_i32, %c0_i32_0 : i32, i32
  }
  func.func @transform_4(%arg0: i32) -> (i32, i32) {
    %c0_i32 = arith.constant 0 : i32
    %c0_i32_0 = arith.constant 0 : i32
    %c0_i32_1 = arith.constant 0 : i32
    return %c0_i32, %c0_i32_0 : i32, i32
  }
  func.func @transform_5(%arg0: i32) -> (i32, i32) {
    %c0_i32 = arith.constant 0 : i32
    %c0_i32_0 = arith.constant 0 : i32
    %c0_i32_1 = arith.constant 0 : i32
    return %c0_i32, %c0_i32_0 : i32, i32
  }
  func.func @transform_6(%arg0: i32) -> (i32, i32, i32) {
    %c0_i32 = arith.constant 0 : i32
    %c0_i32_0 = arith.constant 0 : i32
    %c0_i32_1 = arith.constant 0 : i32
    return %arg0, %c0_i32, %c0_i32_0 : i32, i32, i32
  }
}

module attributes {stable_mosaic.version = 11 : i64} {
  func.func @_bn_se_res_relu_kernel(%arg0: i32, %arg1: memref<1x32x256xf32, #tpu.memory_space<vmem>>, %arg2: memref<1x32x256xf32, #tpu.memory_space<vmem>>, %arg3: memref<32x1xf32, #tpu.memory_space<vmem>>, %arg4: memref<32x1xf32, #tpu.memory_space<vmem>>, %arg5: memref<2x32xf32, #tpu.memory_space<vmem>>, %arg6: memref<32x2xf32, #tpu.memory_space<vmem>>, %arg7: memref<1x32x256xf32, #tpu.memory_space<vmem>>) attributes {dimension_semantics = [#tpu.dimension_semantics<parallel>], iteration_bounds = array<i64: 2>, scalar_prefetch = 0 : i64, scratch_operands = 0 : i64, tpu.core_type = #tpu.core_type<tc>, window_params = [{transform_indices = @transform_0, window_bounds = array<i64: 1, 32, 256>}, {transform_indices = @transform_1, window_bounds = array<i64: 1, 32, 256>}, {pipeline_mode = #tpu.pipeline_mode<synchronous>, transform_indices = @transform_2, window_bounds = array<i64: 32, 1>}, {pipeline_mode = #tpu.pipeline_mode<synchronous>, transform_indices = @transform_3, window_bounds = array<i64: 32, 1>}, {pipeline_mode = #tpu.pipeline_mode<synchronous>, transform_indices = @transform_4, window_bounds = array<i64: 2, 32>}, {pipeline_mode = #tpu.pipeline_mode<synchronous>, transform_indices = @transform_5, window_bounds = array<i64: 32, 2>}, {transform_indices = @transform_6, window_bounds = array<i64: 1, 32, 256>}]} {
    %c0 = arith.constant 0 : index
    %c0_0 = arith.constant 0 : index
    %c0_1 = arith.constant 0 : index
    %0 = vector.load %arg1[%c0, %c0_0, %c0_1] : memref<1x32x256xf32, #tpu.memory_space<vmem>>, vector<1x32x256xf32>
    %c0_2 = arith.constant 0 : index
    %c0_3 = arith.constant 0 : index
    %1 = vector.load %arg3[%c0_2, %c0_3] : memref<32x1xf32, #tpu.memory_space<vmem>>, vector<32x1xf32>
    %c0_4 = arith.constant 0 : index
    %c0_5 = arith.constant 0 : index
    %2 = vector.load %arg4[%c0_4, %c0_5] : memref<32x1xf32, #tpu.memory_space<vmem>>, vector<32x1xf32>
    %3 = vector.shape_cast %1 : vector<32x1xf32> to vector<1x32x1xf32>
    %4 = vector.broadcast %3 : vector<1x32x1xf32> to vector<1x32x256xf32>
    %5 = arith.mulf %0, %4 : vector<1x32x256xf32>
    %6 = vector.shape_cast %2 : vector<32x1xf32> to vector<1x32x1xf32>
    %7 = vector.broadcast %6 : vector<1x32x1xf32> to vector<1x32x256xf32>
    %8 = arith.addf %5, %7 : vector<1x32x256xf32>
    %cst = arith.constant dense<0.000000e+00> : vector<1x32xf32>
    %9 = vector.multi_reduction <add>, %0, %cst [2] : vector<1x32x256xf32> to vector<1x32xf32>
    %cst_6 = arith.constant 3.906250e-03 : f32
    %10 = vector.broadcast %cst_6 : f32 to vector<1x32xf32>
    %11 = arith.mulf %9, %10 : vector<1x32xf32>
    %12 = vector.shape_cast %1 : vector<32x1xf32> to vector<32xf32>
    %13 = vector.shape_cast %12 : vector<32xf32> to vector<1x32xf32>
    %14 = arith.mulf %11, %13 : vector<1x32xf32>
    %15 = vector.shape_cast %2 : vector<32x1xf32> to vector<32xf32>
    %16 = vector.shape_cast %15 : vector<32xf32> to vector<1x32xf32>
    %17 = arith.addf %14, %16 : vector<1x32xf32>
    %c0_7 = arith.constant 0 : index
    %c0_8 = arith.constant 0 : index
    %18 = vector.load %arg5[%c0_7, %c0_8] : memref<2x32xf32, #tpu.memory_space<vmem>>, vector<2x32xf32>
    %c0_9 = arith.constant 0 : index
    %c0_10 = arith.constant 0 : index
    %19 = vector.load %arg6[%c0_9, %c0_10] : memref<32x2xf32, #tpu.memory_space<vmem>>, vector<32x2xf32>
    %20 = vector.shape_cast %17 : vector<1x32xf32> to vector<1x1x32xf32>
    %21 = vector.shape_cast %18 : vector<2x32xf32> to vector<1x2x32xf32>
    %22 = vector.broadcast %20 : vector<1x1x32xf32> to vector<1x2x32xf32>
    %23 = arith.mulf %22, %21 : vector<1x2x32xf32>
    %cst_11 = arith.constant dense<0.000000e+00> : vector<1x2xf32>
    %24 = vector.multi_reduction <add>, %23, %cst_11 [2] : vector<1x2x32xf32> to vector<1x2xf32>
    %cst_12 = arith.constant 0.000000e+00 : f32
    %25 = vector.broadcast %cst_12 : f32 to vector<1x2xf32>
    %26 = arith.maximumf %24, %25 : vector<1x2xf32>
    %27 = vector.shape_cast %26 : vector<1x2xf32> to vector<1x1x2xf32>
    %28 = vector.shape_cast %19 : vector<32x2xf32> to vector<1x32x2xf32>
    %29 = vector.broadcast %27 : vector<1x1x2xf32> to vector<1x32x2xf32>
    %30 = arith.mulf %29, %28 : vector<1x32x2xf32>
    %cst_13 = arith.constant dense<0.000000e+00> : vector<1x32xf32>
    %31 = vector.multi_reduction <add>, %30, %cst_13 [2] : vector<1x32x2xf32> to vector<1x32xf32>
    %32 = arith.negf %31 : vector<1x32xf32>
    %33 = math.exp %32 : vector<1x32xf32>
    %cst_14 = arith.constant 1.000000e+00 : f32
    %34 = vector.broadcast %cst_14 : f32 to vector<1x32xf32>
    %35 = arith.addf %34, %33 : vector<1x32xf32>
    %36 = arith.divf %34, %35 : vector<1x32xf32>
    %37 = vector.shape_cast %36 : vector<1x32xf32> to vector<1x32x1xf32>
    %38 = vector.broadcast %37 : vector<1x32x1xf32> to vector<1x32x256xf32>
    %39 = arith.mulf %8, %38 : vector<1x32x256xf32>
    %c0_15 = arith.constant 0 : index
    %c0_16 = arith.constant 0 : index
    %c0_17 = arith.constant 0 : index
    %40 = vector.load %arg2[%c0_15, %c0_16, %c0_17] : memref<1x32x256xf32, #tpu.memory_space<vmem>>, vector<1x32x256xf32>
    %41 = arith.addf %39, %40 : vector<1x32x256xf32>
    %cst_18 = arith.constant 0.000000e+00 : f32
    %42 = vector.broadcast %cst_18 : f32 to vector<1x32x256xf32>
    %43 = arith.maximumf %41, %42 : vector<1x32x256xf32>
    %c0_19 = arith.constant 0 : index
    %c0_20 = arith.constant 0 : index
    %c0_21 = arith.constant 0 : index
    %44 = vector.load %arg7[%c0_19, %c0_20, %c0_21] : memref<1x32x256xf32, #tpu.memory_space<vmem>>, vector<1x32x256xf32>
    tpu.vector_store %arg7[%c0_19, %c0_20, %c0_21], %43 {strides = array<i32>} : memref<1x32x256xf32, #tpu.memory_space<vmem>>, vector<1x32x256xf32>,
    return
  }
  func.func @transform_0(%arg0: i32) -> (i32, i32, i32) {
    %c0_i32 = arith.constant 0 : i32
    %c0_i32_0 = arith.constant 0 : i32
    %c0_i32_1 = arith.constant 0 : i32
    return %arg0, %c0_i32, %c0_i32_0 : i32, i32, i32
  }
  func.func @transform_1(%arg0: i32) -> (i32, i32, i32) {
    %c0_i32 = arith.constant 0 : i32
    %c0_i32_0 = arith.constant 0 : i32
    %c0_i32_1 = arith.constant 0 : i32
    return %arg0, %c0_i32, %c0_i32_0 : i32, i32, i32
  }
  func.func @transform_2(%arg0: i32) -> (i32, i32) {
    %c0_i32 = arith.constant 0 : i32
    %c0_i32_0 = arith.constant 0 : i32
    %c0_i32_1 = arith.constant 0 : i32
    return %c0_i32, %c0_i32_0 : i32, i32
  }
  func.func @transform_3(%arg0: i32) -> (i32, i32) {
    %c0_i32 = arith.constant 0 : i32
    %c0_i32_0 = arith.constant 0 : i32
    %c0_i32_1 = arith.constant 0 : i32
    return %c0_i32, %c0_i32_0 : i32, i32
  }
  func.func @transform_4(%arg0: i32) -> (i32, i32) {
    %c0_i32 = arith.constant 0 : i32
    %c0_i32_0 = arith.constant 0 : i32
    %c0_i32_1 = arith.constant 0 : i32
    return %c0_i32, %c0_i32_0 : i32, i32
  }
  func.func @transform_5(%arg0: i32) -> (i32, i32) {
    %c0_i32 = arith.constant 0 : i32
    %c0_i32_0 = arith.constant 0 : i32
    %c0_i32_1 = arith.constant 0 : i32
    return %c0_i32, %c0_i32_0 : i32, i32
  }
  func.func @transform_6(%arg0: i32) -> (i32, i32, i32) {
    %c0_i32 = arith.constant 0 : i32
    %c0_i32_0 = arith.constant 0 : i32
    %c0_i32_1 = arith.constant 0 : i32
    return %arg0, %c0_i32, %c0_i32_0 : i32, i32, i32
  }
}

</mosaic_0001>

<bundles_post_ra>
// kernel: tpu_custom_call.1
= control target key start
LH: loop header
LB: loop body
LE: loop exit
PB: predicated region body
PF: predicated region fallthrough
CT: control target
= control target key end

     0   :  { %s2133_s0 = inlined_call_operand.hbm [shape: f32[2,32,256], index: 0, kind: input, shape index: {}]   ;;  %s2134_s1 = inlined_call_operand.hbm [shape: f32[2,32,256], index: 1, kind: input, shape index: {}]   ;;  %s2135_s2 = inlined_call_operand.vmem [shape: f32[32,1], index: 2, kind: input, shape index: {}]   ;;  %s2136_s3 = inlined_call_operand.vmem [shape: f32[32,1], index: 3, kind: input, shape index: {}]   ;;  %s2137_s4 = inlined_call_operand.vmem [shape: f32[2,32], index: 4, kind: input, shape index: {}]   ;;  %s2138_s5 = inlined_call_operand.vmem [shape: f32[32,2], index: 5, kind: input, shape index: {}]   ;;  %s2139_s6 = inlined_call_operand.hbm [shape: f32[2,32,256], index: 6, kind: output, shape index: {}]  }
   0x1   :  { %2144 = sst [smem:[#allocation11_spill]] %s2133_s0 }
   0x2   :  { %11 = vsyncpa [#allocation3], 0 }
   0x3   :  { %13 = vsyncpa [#allocation3 + $0x1], 0 }
   0x4   :  { %14 = vsyncpa [#allocation6], 0 }
   0x5   :  { %16 = vsyncpa [#allocation6 + $0x1], 0 }
   0x6   :  { %17 = vsyncpa [#allocation4], 0 }
   0x7   :  { %19 = vsyncpa [#allocation4 + $0x1], 0  ;;  %s1593_s21 = smov 0   ;;  %s1595_s22 = smov 0  }
   0x8   :  { %s1597_s23 = smov 0   ;;  %s1599_s24 = smov 0  }
   0x9 LB: > { %s1614_s25 = sadd.s32 4294967295, %s1548_s24   ;;  %s1325_s26 = sadd.s32 4294967294, %s1548_s24   ;;  %s1548_s24 = sphi %s1599_s24, %s2161_s24   ;;  %s1544_s23 = sphi %s1597_s23, %s2160_s23   ;;  %s1540_s22 = sphi %s1595_s22, %s2159_s22   ;;  %s1536_s21 = sphi %s1593_s21, %s2158_s21  }
   0xa   : > { %s1618_s27 = sadd.s32 1, %s1548_s24   ;;  %s32_s28 = sadd.s32 1, %s1544_s23 }
   0xb   : > { %s29_s29 = ssub.s32 %s1548_s24, %s1618_s27  ;;  %p39_p0 = scmp.ne.s32.totalorder %s1544_s23, %s1540_s22 }
   0xc   : > { %p30_p1 = scmp.eq.s32.totalorder %s29_s29, 0  ;;  %p40_p2 = scmp.eq.s32.totalorder %s1548_s24, 0 }
   0xd   : > { %p45_p3 = scmp.ne.s32.totalorder %s1540_s22, %s1536_s21  ;;  %p46_p4 = scmp.eq.s32.totalorder %s1614_s25, 0 }
   0xe   : > { %s1630_s30 = scalar_select %p30_p1, %s1544_s23, %s32_s28  }
   0xf   : > { %p1632_p5 = por %p40_p2, %p39_p0  ;;  %p1636_p6 = por %p46_p4, %p45_p3 }
  0x10   : > { %p179_p7 = scmp.eq.s32.totalorder %s1614_s25, 1  ;;  %p185_p8 = scmp.eq.s32.totalorder %s1325_s26, 1 }
  0x11   : > { %s2146_s8 = scalar_select %p1636_p6, 1, 0 }
  0x12   : > { %p1367_p10 = scmp.lt.s32.totalorder %s1548_s24, 2  ;;  %p1643_p11 = por %p179_p7, %p39_p0 }
  0x13   : > { %p1647_p12 = por %p185_p8, %p45_p3  ;;  %s1652_s11 = sand.u32 1, %s1544_s23  }
  0x14   : > { %s2147_s9 = scalar_select %p1643_p11, 1, 0 }
  0x15   : > { %s2148_s10 = scalar_select %p1647_p12, 1, 0 }
  0x16   : > { %s1347_s12 = sshll.u32 %s1548_s24, 10  ;;  %s2140_s13 = sshll.u32 %s1652_s11, 6 }
  0x17   : > { %s2149_s0 = sld [smem:[#allocation11_spill]]  ;;  %s221_s17 = scalar_lea.vmem [#allocation2], %s2140_s13 }
  0x18   : > { %s228_s18 = sshll.u32 %s221_s17, 4  ;;  %p1667_p13 = pnand %p1367_p10, %p1632_p5  ;;  %s1671_s18 = int_to_ptr.vmem [resolvable:$true] %s228_s18 }
  0x19   : > { %s218_s20 = scalar_lea.sflag [#allocation3], %s1652_s11 }
  0x1a   : > { %p1426_p1 = pneg %p1667_p13 }
  0x1d   : > { %s1661_s16 = scalar_lea.hbm %s2149_s0, %s1347_s12  ;;  %s1429_s7 = scalar_lea.hbm %s2149_s0, 2048 }
  0x1e   : > { %s1424_s26 = scalar_lea.hbm %s1661_s16, 1024  ;;  %p1430_p4 = scmp.lt.s32.totalorder %s1661_s16, %s2149_s0 }
  0x1f   : > { %p1425_p0 = scmp.ne.s32.totalorder %s1661_s16, %s1424_s26  ;;  %p1431_p5 = scmp.lt.s32.totalorder %s1429_s7, %s1424_s26 }
  0x21   : > { %p1427_p2 = pnand %p1426_p1, %p1425_p0  ;;  %p1432_p7 = por %p1431_p5, %p1430_p4 }
  0x23   : > { %p1428_p3 = pneg %p1427_p2 }
  0x25   : > { %p1433_p8 = pnand %p1432_p7, %p1428_p3 }
  0x27   : > { %1436 = shalt.err (!%p1433_p8)
}
  0x28   : > { %s1437_s17 = scalar_lea.vmem %s1671_s18, 1024  ;;  %s1550_s28 = smov [#allocation2]  }
  0x29   : > { %p1438_p10 = scmp.ne.s32.totalorder %s1671_s18, %s1437_s17  ;;  %s1442_s29 = sshll.u32 %s1550_s28, 4  ;;  %s1443_s29 = int_to_ptr.vmem [resolvable:$false] %s1442_s29 }
  0x2a   : > { %s1444_s13 = scalar_lea.vmem %s1443_s29, 2048  ;;  %p1445_p9 = scmp.lt.s32.totalorder %s1671_s18, %s1443_s29 }
  0x2b   : > { %p1440_p0 = pnand %p1438_p10, %p1426_p1  ;;  %p1446_p12 = scmp.lt.s32.totalorder %s1444_s13, %s1437_s17 }
  0x2d   : > { %p1441_p2 = pneg %p1440_p0  ;;  %p1447_p11 = por %p1446_p12, %p1445_p9 }
  0x2f   : > { %p1448_p4 = pnand %p1447_p11, %p1441_p2 }
  0x31   : > { %1451 = shalt.err (!%p1448_p4)
}
  0x32   : > { %s2142_s26 = smov 256   ;;  %s1552_s7 = smov 16  }
  0x33   : > { %1359 = dma.hbm_to_vmem [thread:$0]  (!%p1667_p13), %s1661_s16, 1024, %s1671_s18, %s218_s20, %s2142_s26, %s2142_s26, %s1552_s7  }
  0x34   : > { %p1334_p9 = scmp.ge.s32.totalorder %s1548_s24, 1  ;;  %p257_p11 = scmp.lt.s32.totalorder %s1548_s24, 3 }
  0x35   : > { %s1714_s17 = scalar_lea.hbm %s2134_s1, %s1347_s12  ;;  %s2152_s28 = sshll.u32 %s1652_s11, 6 }
  0x36   : > { %p1705_p12 = pnand %p1334_p9, %p257_p11  ;;  %s242_s29 = scalar_lea.vmem [#allocation5], %s2152_s28 }
  0x37   : > { %s249_s0 = sshll.u32 %s242_s29, 4  ;;  %s239_s16 = scalar_lea.sflag [#allocation6], %s1652_s11  ;;  %s1718_s0 = int_to_ptr.vmem [resolvable:$true] %s249_s0 }
  0x38   : > { %s1452_s18 = scalar_lea.hbm %s1714_s17, 1024  ;;  %s1457_s12 = scalar_lea.hbm %s2134_s1, 2048 }
  0x39   : > { %p1453_p3 = scmp.ne.s32.totalorder %s1714_s17, %s1452_s18  ;;  %p1458_p8 = scmp.lt.s32.totalorder %s1714_s17, %s2134_s1 }
  0x3a   : > { %p1459_p10 = scmp.lt.s32.totalorder %s1457_s12, %s1452_s18 }
  0x3b   : > { %p1455_p5 = pnand %p1453_p3, %p1426_p1 }
  0x3c   : > { %p1460_p0 = por %p1459_p10, %p1458_p8 }
  0x3d   : > { %p1456_p7 = pneg %p1455_p5 }
  0x3f   : > { %p1461_p2 = pnand %p1460_p0, %p1456_p7 }
  0x41   : > { %1464 = shalt.err (!%p1461_p2)
}
  0x42   : > { %s1465_s11 = scalar_lea.vmem %s1718_s0, 1024  ;;  %s1553_s26 = smov [#allocation5]  }
  0x43   : > { %p1466_p4 = scmp.ne.s32.totalorder %s1718_s0, %s1465_s11  ;;  %s1470_s28 = sshll.u32 %s1553_s26, 4  ;;  %s1471_s28 = int_to_ptr.vmem [resolvable:$false] %s1470_s28 }
  0x44   : > { %s1472_s29 = scalar_lea.vmem %s1471_s28, 2048  ;;  %p1473_p3 = scmp.lt.s32.totalorder %s1718_s0, %s1471_s28 }
  0x45   : > { %p1468_p9 = pnand %p1466_p4, %p1426_p1  ;;  %p1474_p5 = scmp.lt.s32.totalorder %s1472_s29, %s1465_s11 }
  0x47   : > { %p1469_p11 = pneg %p1468_p9  ;;  %p1475_p6 = por %p1474_p5, %p1473_p3 }
  0x49   : > { %p1476_p8 = pnand %p1475_p6, %p1469_p11 }
  0x4b   : > { %1479 = shalt.err (!%p1476_p8)
}
  0x4c   : > { %s2153_s18 = smov 256   ;;  %261 = sbr.rel (%p1705_p12) target bundleno = 908 (0x38c), region = 44 }
  0x4d   : > { %1362 = dma.hbm_to_vmem [thread:$0]  (!%p1667_p13), %s1714_s17, 1024, %s1718_s0, %s239_s16, %s2153_s18, %s2153_s18, %s1552_s7  }
  0x4e   : > { %s1749_s20 = sand.u32 (!%p1705_p12), 1, %s1540_s22   ;;  %p2154_p6 = scmp.ne.s32.totalorder (!%p1705_p12), %s2146_s8, 0 }
  0x4f   : > { %s1752_s12 = sshll.u32 (!%p1705_p12), %s1749_s20, 6  ;;  %s264_s14 = scalar_lea.sflag (!%p1705_p12), [#allocation3], %s1749_s20 }
  0x50   : > { %s267_s19 = scalar_lea.vmem (!%p1705_p12), [#allocation2], %s1752_s12 }
  0x51   : > { %1523 = dma.done.wait (%p2154_p6), %s264_s14, 1024  }
  0x52   : > { %1525 = vsyncadd (%p2154_p6), %s264_s14, 4294966272  ;;  %s273_s0 = scalar_lea.sflag [#allocation6], %s1749_s20  ;;  %s1762_s7 = scalar_lea.vmem [#allocation5], %s1752_s12 }
  0x53   : > { %1527 = dma.done.wait (%p2154_p6), %s273_s0, 1024  }
  0x54   : > { %1529 = vsyncadd (%p2154_p6), %s273_s0, 4294966272  ;;  %v1554_v0 = vmov 0   ;;  %v1768_v1 = vld [vmem:[%s267_s19 + $0x20] sm:$0xff]  ;;  %v1770_v2 = vld [vmem:[%s267_s19 + $0x28] sm:$0xff]  ;;  %v412_v13 = vlaneseq  ;;  %vm509_vm0 = vcmask 130112   ;;  %vm516_vm1 = vcmask 195712  }
  0x55   : > { %1406 = vset.pattern.permute.xlu1 %v1554_v0  ;;  %1407 = vset.pattern.permute.xlu0 %v1554_v0  ;;  %v1772_v3 = vld [vmem:[%s267_s19] sm:$0xff]  ;;  %v388_v4 = vadd.f32 %v1770_v2, %v1768_v1  ;;  %v1776_v5 = vld [vmem:[%s267_s19 + $0x8] sm:$0xff]  ;;  %v1778_v6 = vld [vmem:[%s267_s19 + $0x30] sm:$0xff]  ;;  %vm523_vm2 = vcmask 261312   ;;  %vm544_vm3 = vcmask 1041409   ;;  %vm547_vm4 = vcmask 254976  }
  0x56   : > { %v1780_v7 = vld [vmem:[%s267_s19 + $0x38] sm:$0xff]  ;;  %v382_v8 = vadd.f32 %v1776_v5, %v1772_v3  ;;  %v1784_v9 = vld [vmem:[%s267_s19 + $0x10] sm:$0xff]  ;;  %v1793_v14 = vshrl.u32 %v412_v13, 7  ;;  %v406_v16 = vld [vmem:[%s2137_s4] sm:$0x3]  ;;  %vm1101_vm5 = vcmask 1042434  }
  0x57   : > { %v1786_v10 = vld [vmem:[%s267_s19 + $0x18] sm:$0xff]  ;;  %389 = vadd.xlane.f32.xlu1 %v388_v4  ;;  %v391_v11 = vadd.f32 %v1780_v7, %v1778_v6  ;;  %v319_v20 = vld [vmem:[%s2135_s2 + $0x8] sm:$0xff]  ;;  %v318_v21 = vld [vmem:[%s2135_s2] sm:$0xff]  ;;  %vm1103_vm6 = vcmask 1043459   ;;  %vm1105_vm7 = vcmask 1044484   ;;  %vm1107_vm8 = vcmask 1045509  }
  0x58   : > { %383 = vadd.xlane.f32.xlu0 %v382_v8  ;;  %v385_v12 = vadd.f32 %v1786_v10, %v1784_v9  ;;  %v1796_v15 = vsub.s32 0, %v1793_v14  ;;  %v1803_v18 = vsub.s32 1, %v1793_v14  ;;  %v321_v22 = vld [vmem:[%s2135_s2 + $0x18] sm:$0xff]  ;;  %v320_v23 = vld [vmem:[%s2135_s2 + $0x10] sm:$0xff]  ;;  %v323_v24 = vld [vmem:[%s2136_s3 + $0x8] sm:$0xff]  ;;  %v1850_v0 = vsub.s32 3, %v1793_v14 }
  0x59   : > { %v322_v25 = vld [vmem:[%s2136_s3] sm:$0xff]  ;;  %v324_v26 = vld [vmem:[%s2136_s3 + $0x10] sm:$0xff]  ;;  %v1837_v53 = vld [vmem:[%s2136_s3 + $0x18] sm:$0xff]  ;;  %vm1109_vm9 = vcmask 1046534   ;;  %vm1111_vm10 = vcmask 1047559   ;;  %vm1138_vm11 = vcmask 15360  }
  0x5a   : > { %v415_v17 = vrot.slane %v406_v16, %v1796_v15  ;;  %v434_v19 = vrot.slane %v406_v16, %v1803_v18  ;;  %v1830_v27 = vld [vmem:[%s2138_s5] sm:$0xff]  ;;  %v1842_v56 = vld [vmem:[%s2138_s5 + $0x18] sm:$0xff]  ;;  %v1855_v4 = vld [vmem:[%s2138_s5 + $0x8] sm:$0xff]  ;;  %s309_s8 = scalar_lea.vmem [#allocation7], %s1752_s12  ;;  %s1349_s13 = sshll.u32 %s1614_s25, 10 }
  0x5b   : > { %392 = vadd.xlane.f32.xlu1 %v391_v11  ;;  %v559_v28 = vrot.slane %v1830_v27, %v1796_v15  ;;  %v734_v60 = vrot.slane %v1842_v56, %v1803_v18  ;;  %v566_v63 = vrot.slane %v1830_v27, %v1803_v18  ;;  %v409_v8 = vld [vmem:[%s2138_s5 + $0x10] sm:$0xff]  ;;  %v615_v16 = vrot.slane %v1855_v4, %v1796_v15  ;;  %s1229_s12 = sshll.u32 %s309_s8, 4  ;;  %s2088_s15 = scalar_lea.hbm %s2139_s6, %s1349_s13  ;;  %s2090_s12 = int_to_ptr.vmem [resolvable:$true] %s1229_s12 }
  0x5c   : > { %386 = vadd.xlane.f32.xlu0 %v385_v12  ;;  %s1216_s25 = scalar_lea.sflag [#allocation4], %s1749_s20  ;;  %p2155_p1 = scmp.ne.s32.totalorder %s2147_s9, 0 }
  0x5d   : > { %s1555_s11 = smov [#allocation7]  }
  0x5e   : > { %s1484_s26 = sshll.u32 %s1555_s11, 4  ;;  %s1485_s26 = int_to_ptr.vmem [resolvable:$false] %s1484_s26 }
  0x5f   : > { %s1486_s28 = scalar_lea.vmem %s1485_s26, 2048  ;;  %p1487_p10 = scmp.lt.s32.totalorder %s2090_s12, %s1485_s26 }
  0x6c   : > { %421 = vbcast.lane.b32.xlu1 %v415_v17, 264 }
  0x70   : > { %436 = vbcast.lane.b32.xlu1 %v434_v19, 256 }
  0x72   : > { %417 = vbcast.lane.b32.xlu0 %v415_v17, 256 }
  0x74   : > { %440 = vbcast.lane.b32.xlu1 %v434_v19, 264 }
  0x76   : > { %425 = vbcast.lane.b32.xlu0 %v415_v17, 272 }
  0x78   : > { %444 = vbcast.lane.b32.xlu1 %v434_v19, 272 }
  0x7a   : > { %429 = vbcast.lane.b32.xlu0 %v415_v17, 280  ;;  %v692_v17 = vrot.slane %v409_v8, %v1850_v0 }
  0x7c   : > { %448 = vbcast.lane.b32.xlu1 %v434_v19, 280  ;;  %v586_v19 = vsub.s32 4, %v1793_v14 }
  0x7e   : > { %333 = vperm.xlu0 %1407, %v319_v20  }
  0x80   : > { %328 = vperm.xlu1 %1406, %v318_v21  }
  0x82   : > { %343 = vperm.xlu0 %1407, %v321_v22  }
  0x84   : > { %338 = vperm.xlu1 %1406, %v320_v23  }
  0x86   : > { %361 = vperm.xlu0 %1407, %v323_v24  }
  0x88   : > { %356 = vperm.xlu1 %1406, %v322_v25  }
  0x8c   : > { %366 = vperm.xlu1 %1406, %v324_v26  }
  0x90   : > { %561 = vbcast.lane.b32.xlu1 %v559_v28, 256 }
  0xe0   : > { %v390_v29 = vpop.xlane.xlu1 %389 }
  0xe1   : > { %v384_v30 = vpop.xlane.xlu0 %383  ;;  %v396_v40 = vmul.f32 0.00390625, %v390_v29 }
  0xe2   : > { %v394_v31 = vmul.f32 0.00390625, %v384_v30 }
  0xe3   : > { %v400_v45 = vmul.f32 %v396_v40, %v320_v23  ;;  %v622_v23 = vrot.slane %v1855_v4, %v1803_v18 }
  0xe4   : > { %v398_v32 = vmul.f32 %v394_v31, %v318_v21  ;;  %v393_v33 = vpop.xlane.xlu1 %392  ;;  %v593_v31 = vsub.s32 5, %v1793_v14 }
  0xe5   : > { %v387_v34 = vpop.xlane.xlu0 %386  ;;  %v397_v46 = vmul.f32 0.00390625, %v393_v33  ;;  %v404_v52 = vadd.f32 %v400_v45, %v324_v26 }
  0xe6   : > { %v395_v35 = vmul.f32 0.00390625, %v387_v34  ;;  %v402_v36 = vadd.f32 %v398_v32, %v322_v25 }
  0xe7   : > { %v401_v51 = vmul.f32 %v397_v46, %v321_v22  ;;  %v580_v46 = vrot.slane %v1830_v27, %v1850_v0 }
  0xe8   : > { %v399_v37 = vmul.f32 %v395_v35, %v319_v20  ;;  %v422_v38 = vpop.permute.xlu1 %421  ;;  %v727_v35 = vrot.slane %v1842_v56, %v1796_v15 }
  0xe9   : > { %v418_v39 = vpop.permute.xlu0 %417  ;;  %v405_v59 = vadd.f32 %v401_v51, %v1837_v53  ;;  %v650_v51 = vrot.slane %v1855_v4, %v593_v31 }
  0xea   : > { %v403_v41 = vadd.f32 %v399_v37, %v323_v24  ;;  %v458_v42 = vmul.f32 %v418_v39, %v402_v36  ;;  %v587_v24 = vrot.slane %v1830_v27, %v586_v19  ;;  %v706_v37 = vrot.slane %v409_v8, %v593_v31 }
  0xec   : > { %v459_v43 = vmul.f32 %v422_v38, %v403_v41  ;;  %475 = vperm.xlu0 %1407, %v458_v42   ;;  %v437_v44 = vpop.permute.xlu1 %436  ;;  %v600_v38 = vsub.s32 6, %v1793_v14  ;;  %v607_v42 = vsub.s32 7, %v1793_v14 }
  0xed   : > { %v426_v47 = vpop.permute.xlu0 %425  ;;  %v462_v48 = vmul.f32 %v437_v44, %v402_v36  ;;  %v572_v36 = vsub.s32 2, %v1793_v14 }
  0xee   : > { %478 = vperm.xlu1 %1406, %v459_v43   ;;  %v460_v54 = vmul.f32 %v426_v47, %v404_v52  ;;  %v601_v40 = vrot.slane %v1830_v27, %v600_v38  ;;  %v608_v43 = vrot.slane %v1830_v27, %v607_v42  ;;  %v720_v45 = vrot.slane %v409_v8, %v607_v42 }
  0xef   : > { %v573_v39 = vrot.slane %v1830_v27, %v572_v36  ;;  %v741_v44 = vrot.slane %v1842_v56, %v572_v36  ;;  %v636_v47 = vrot.slane %v1855_v4, %v1850_v0 }
  0xf0   : > { %v441_v49 = vpop.permute.xlu1 %440 }
  0xf1   : > { %v463_v50 = vmul.f32 %v441_v49, %v403_v41  ;;  %v430_v57 = vpop.permute.xlu0 %429  ;;  %v713_v41 = vrot.slane %v409_v8, %v600_v38  ;;  %v643_v49 = vrot.slane %v1855_v4, %v586_v19 }
  0xf2   : > { %487 = vperm.xlu1 %1406, %v462_v48   ;;  %v461_v61 = vmul.f32 %v430_v57, %v405_v59  ;;  %v748_v48 = vrot.slane %v1842_v56, %v1850_v0  ;;  %v776_v57 = vrot.slane %v1842_v56, %v607_v42  ;;  %v499_v0 = vand.u32 127, %v412_v13 }
  0xf3   : > { %490 = vperm.xlu0 %1407, %v463_v50   ;;  %v755_v50 = vrot.slane %v1842_v56, %v586_v19 }
  0xf4   : > { %v445_v55 = vpop.permute.xlu1 %444 }
  0xf5   : > { %v464_v58 = vmul.f32 %v445_v55, %v404_v52  ;;  %v657_v52 = vrot.slane %v1855_v4, %v600_v38  ;;  %v664_v55 = vrot.slane %v1855_v4, %v607_v42 }
  0xf6   : > { %481 = vperm.xlu1 %1406, %v460_v54   ;;  %v769_v54 = vrot.slane %v1842_v56, %v600_v38 }
  0xf7   : > { %493 = vperm.xlu0 %1407, %v464_v58  }
  0xf8   : > { %v449_v62 = vpop.permute.xlu1 %448 }
  0xf9   : > { %v465_v12 = vmul.f32 %v449_v62, %v405_v59  ;;  %v1907_v58 = vpop.permute.xlu0 %333 }
  0xfa   : > { %484 = vperm.xlu1 %1406, %v461_v61  }
  0xfb   : > { %736 = vbcast.lane.b32.xlu0 %v734_v60, 256 }
  0xfc   : > { %v329_v11 = vpop.permute.xlu1 %328 }
  0xfd   : > { %v346_v21 = vmul.f32 %v329_v11, %v1772_v3  ;;  %v347_v22 = vmul.f32 %v329_v11, %v1776_v5  ;;  %v671_v3 = vrot.slane %v409_v8, %v1796_v15  ;;  %v699_v5 = vrot.slane %v409_v8, %v586_v19  ;;  %v1909_v59 = vpop.permute.xlu0 %343 }
  0xfe   : > { %568 = vbcast.lane.b32.xlu1 %v566_v63, 256  ;;  %v685_v15 = vrot.slane %v409_v8, %v572_v36 }
  0xff   : > { %496 = vperm.xlu0 %1407, %v465_v12   ;;  %v504_v12 = vadd.s32 4294967288, %v499_v0 }
 0x100   : > { %v339_v20 = vpop.permute.xlu1 %338 }
 0x101   : > { %v350_v26 = vmul.f32 %v339_v20, %v1768_v1  ;;  %v351_v28 = vmul.f32 %v339_v20, %v1770_v2  ;;  %v678_v1 = vrot.slane %v409_v8, %v1803_v18  ;;  %v594_v2 = vrot.slane %v1830_v27, %v593_v31  ;;  %v1913_v61 = vpop.permute.xlu0 %361 }
 0x102   : > { %617 = vbcast.lane.b32.xlu1 %v615_v16, 256  ;;  %v629_v18 = vrot.slane %v1855_v4, %v572_v36  ;;  %v762_v27 = vrot.slane %v1842_v56, %v593_v31  ;;  %v511_v4 = vadd.s32 4294967280, %v499_v0  ;;  %v507_v19 = vsub.s32 %v504_v12, %v1793_v14 }
 0x103   : > { %694 = vbcast.lane.b32.xlu0 %v692_v17, 256  ;;  %v518_v17 = vadd.s32 4294967272, %v499_v0 }
 0x104   : > { %v357_v25 = vpop.permute.xlu1 %356  ;;  %v514_v20 = vsub.s32 %v511_v4, %v1793_v14 }
 0x105   : > { %v1871_v29 = vadd.f32 %v357_v25, %v346_v21  ;;  %v1873_v30 = vadd.f32 %v357_v25, %v347_v22  ;;  %v1919_v21 = vsub.s32 %v499_v0, %v1793_v14  ;;  %v521_v22 = vsub.s32 %v518_v17, %v1793_v14 }
 0x106   : > { %624 = vbcast.lane.b32.xlu1 %v622_v23, 256 }
 0x107   : > { %589 = vbcast.lane.b32.xlu0 %v587_v24, 256 }
 0x108   : > { %v367_v32 = vpop.permute.xlu1 %366 }
 0x109   : > { %v1877_v33 = vadd.f32 %v367_v32, %v350_v26  ;;  %v1879_v34 = vadd.f32 %v367_v32, %v351_v28 }
 0x10a   : > { %673 = vbcast.lane.b32.xlu1 %v671_v3, 256 }
 0x10b   : > { %701 = vbcast.lane.b32.xlu0 %v699_v5, 256 }
 0x10c   : > { %v1911_v60 = vpop.permute.xlu1 %561 }
 0x10e   : > { %680 = vbcast.lane.b32.xlu1 %v678_v1, 256 }
 0x10f   : > { %596 = vbcast.lane.b32.xlu0 %v594_v2, 256 }
 0x112   : > { %729 = vbcast.lane.b32.xlu1 %v727_v35, 256 }
 0x113   : > { %708 = vbcast.lane.b32.xlu0 %v706_v37, 256 }
 0x116   : > { %575 = vbcast.lane.b32.xlu1 %v573_v39, 256 }
 0x117   : > { %603 = vbcast.lane.b32.xlu0 %v601_v40, 256 }
 0x11a   : > { %631 = vbcast.lane.b32.xlu1 %v629_v18, 256 }
 0x11b   : > { %715 = vbcast.lane.b32.xlu0 %v713_v41, 256 }
 0x11e   : > { %687 = vbcast.lane.b32.xlu1 %v685_v15, 256 }
 0x11f   : > { %610 = vbcast.lane.b32.xlu0 %v608_v43, 256 }
 0x122   : > { %743 = vbcast.lane.b32.xlu1 %v741_v44, 256 }
 0x123   : > { %722 = vbcast.lane.b32.xlu0 %v720_v45, 256 }
 0x126   : > { %582 = vbcast.lane.b32.xlu1 %v580_v46, 256 }
 0x12a   : > { %638 = vbcast.lane.b32.xlu1 %v636_v47, 256 }
 0x12e   : > { %750 = vbcast.lane.b32.xlu1 %v748_v48, 256 }
 0x132   : > { %645 = vbcast.lane.b32.xlu1 %v643_v49, 256 }
 0x136   : > { %757 = vbcast.lane.b32.xlu1 %v755_v50, 256 }
 0x13a   : > { %652 = vbcast.lane.b32.xlu1 %v650_v51, 256 }
 0x13e   : > { %764 = vbcast.lane.b32.xlu1 %v762_v27, 256 }
 0x142   : > { %659 = vbcast.lane.b32.xlu1 %v657_v52, 256 }
 0x146   : > { %771 = vbcast.lane.b32.xlu1 %v769_v54, 256 }
 0x14a   : > { %666 = vbcast.lane.b32.xlu1 %v664_v55, 256 }
 0x14e   : > { %778 = vbcast.lane.b32.xlu1 %v776_v57, 256 }
 0x167   : > { %v476_v63 = vpop.permute.xlu0 %475 }
 0x168   : > { %v503_v3 = vrot.slane %v476_v63, %v1919_v21 }
 0x169   : > { %v479_v62 = vpop.permute.xlu1 %478 }
 0x16a   : > { %v508_v25 = vrot.slane %v479_v62, %v507_v19 }
 0x16c   : > { %v510_v1 = vsel %vm509_vm0, %v508_v25, %v503_v3 }
 0x16d   : > { %v488_v8 = vpop.permute.xlu1 %487 }
 0x16e   : > { %v491_v11 = vpop.permute.xlu0 %490  ;;  %v528_v5 = vrot.slane %v488_v8, %v1919_v21 }
 0x16f   : > { %v532_v13 = vrot.slane %v491_v11, %v507_v19 }
 0x171   : > { %v482_v16 = vpop.permute.xlu1 %481  ;;  %v533_v2 = vsel %vm509_vm0, %v532_v13, %v528_v5 }
 0x172   : > { %v494_v56 = vpop.permute.xlu0 %493  ;;  %v515_v26 = vrot.slane %v482_v16, %v514_v20 }
 0x173   : > { %v537_v28 = vrot.slane %v494_v56, %v514_v20 }
 0x174   : > { %v517_v14 = vsel %vm516_vm1, %v515_v26, %v510_v1 }
 0x175   : > { %v485_v23 = vpop.permute.xlu1 %484  ;;  %v538_v36 = vsel %vm516_vm1, %v537_v28, %v533_v2 }
 0x176   : > { %v737_v24 = vpop.permute.xlu0 %736  ;;  %v522_v31 = vrot.slane %v485_v23, %v521_v22 }
 0x178   : > { %v524_v37 = vsel %vm523_vm2, %v522_v31, %v517_v14 }
 0x179   : > { %v569_v18 = vpop.permute.xlu1 %568 }
 0x17a   : > { %v497_v32 = vpop.permute.xlu0 %496 }
 0x17b   : > { %v542_v35 = vrot.slane %v497_v32, %v521_v22 }
 0x17d   : > { %v543_v38 = vsel %vm523_vm2, %v542_v35, %v538_v36  ;;  %v618_v41 = vpop.permute.xlu1 %617 }
 0x17e   : > { %v545_v39 = vsel %vm544_vm3, %v543_v38, %v524_v37  ;;  %v695_v42 = vpop.permute.xlu0 %694 }
 0x17f   : > { %v548_v40 = vsel %vm547_vm4, %v545_v39, 0.0 }
 0x180   : > { %549 = vadd.xlane.f32.xlu0 %v548_v40 }
 0x181   : > { %v625_v15 = vpop.permute.xlu1 %624 }
 0x182   : > { %v590_v43 = vpop.permute.xlu0 %589 }
 0x185   : > { %v674_v44 = vpop.permute.xlu1 %673 }
 0x186   : > { %v702_v45 = vpop.permute.xlu0 %701 }
 0x189   : > { %v681_v46 = vpop.permute.xlu1 %680 }
 0x18a   : > { %v597_v47 = vpop.permute.xlu0 %596 }
 0x18d   : > { %v730_v48 = vpop.permute.xlu1 %729 }
 0x18e   : > { %v1925_v49 = vpop.permute.xlu0 %708 }
 0x191   : > { %v576_v50 = vpop.permute.xlu1 %575 }
 0x192   : > { %v1927_v51 = vpop.permute.xlu0 %603 }
 0x195   : > { %v632_v27 = vpop.permute.xlu1 %631 }
 0x196   : > { %v1929_v52 = vpop.permute.xlu0 %715 }
 0x199   : > { %v688_v54 = vpop.permute.xlu1 %687 }
 0x19a   : > { %v1931_v55 = vpop.permute.xlu0 %610 }
 0x19d   : > { %v744_v57 = vpop.permute.xlu1 %743 }
 0x19e   : > { %v1933_v62 = vpop.permute.xlu0 %722 }
 0x1a1   : > { %v583_v63 = vpop.permute.xlu1 %582 }
 0x1a5   : > { %v639_v4 = vpop.permute.xlu1 %638 }
 0x1a9   : > { %v751_v19 = vpop.permute.xlu1 %750 }
 0x1ad   : > { %v646_v23 = vpop.permute.xlu1 %645 }
 0x1b1   : > { %v758_v28 = vpop.permute.xlu1 %757 }
 0x1b5   : > { %v653_v31 = vpop.permute.xlu1 %652 }
 0x1b9   : > { %v765_v35 = vpop.permute.xlu1 %764 }
 0x1bd   : > { %v660_v38 = vpop.permute.xlu1 %659 }
 0x209   : > { %v550_v0 = vpop.xlane.xlu0 %549 }
 0x20a   : > { %v1935_v8 = vmax.f32 %v550_v0, 0.0 }
 0x20c   : > { %v812_v11 = vmul.f32 %v1911_v60, %v1935_v8  ;;  %v813_v12 = vmul.f32 %v569_v18, %v1935_v8  ;;  %v821_v16 = vmul.f32 %v625_v15, %v1935_v8  ;;  %v820_v17 = vmul.f32 %v618_v41, %v1935_v8  ;;  %v772_v41 = vpop.permute.xlu1 %771 }
 0x20d   : > { %v829_v56 = vmul.f32 %v681_v46, %v1935_v8  ;;  %v828_v20 = vmul.f32 %v674_v44, %v1935_v8  ;;  %v837_v60 = vmul.f32 %v737_v24, %v1935_v8  ;;  %v836_v22 = vmul.f32 %v730_v48, %v1935_v8 }
 0x20e   : > { %880 = vperm.xlu1 %1406, %v813_v12   ;;  %877 = vperm.xlu0 %1407, %v812_v11   ;;  %v822_v25 = vmul.f32 %v632_v27, %v1935_v8  ;;  %v814_v13 = vmul.f32 %v576_v50, %v1935_v8  ;;  %v838_v26 = vmul.f32 %v744_v57, %v1935_v8 }
 0x20f   : > { %v830_v3 = vmul.f32 %v688_v54, %v1935_v8  ;;  %v823_v24 = vmul.f32 %v639_v4, %v1935_v8  ;;  %v815_v5 = vmul.f32 %v583_v63, %v1935_v8  ;;  %v839_v32 = vmul.f32 %v751_v19, %v1935_v8 }
 0x210   : > { %v831_v1 = vmul.f32 %v695_v42, %v1935_v8  ;;  %v824_v2 = vmul.f32 %v646_v23, %v1935_v8  ;;  %v816_v14 = vmul.f32 %v590_v43, %v1935_v8  ;;  %v840_v36 = vmul.f32 %v758_v28, %v1935_v8  ;;  %v667_v44 = vpop.permute.xlu1 %666 }
 0x211   : > { %v832_v37 = vmul.f32 %v702_v45, %v1935_v8  ;;  %v825_v39 = vmul.f32 %v653_v31, %v1935_v8  ;;  %v817_v40 = vmul.f32 %v597_v47, %v1935_v8  ;;  %v841_v18 = vmul.f32 %v765_v35, %v1935_v8 }
 0x212   : > { %904 = vperm.xlu1 %1406, %v821_v16   ;;  %901 = vperm.xlu0 %1407, %v820_v17   ;;  %v833_v42 = vmul.f32 %v1925_v49, %v1935_v8  ;;  %v826_v15 = vmul.f32 %v660_v38, %v1935_v8  ;;  %v818_v43 = vmul.f32 %v1927_v51, %v1935_v8 }
 0x213   : > { %v842_v45 = vmul.f32 %v772_v41, %v1935_v8  ;;  %v834_v46 = vmul.f32 %v1929_v52, %v1935_v8  ;;  %v827_v47 = vmul.f32 %v667_v44, %v1935_v8  ;;  %v819_v48 = vmul.f32 %v1931_v55, %v1935_v8 }
 0x214   : > { %v779_v49 = vpop.permute.xlu1 %778  ;;  %v835_v51 = vmul.f32 %v1933_v62, %v1935_v8 }
 0x215   : > { %v843_v50 = vmul.f32 %v779_v49, %v1935_v8 }
 0x216   : > { %928 = vperm.xlu1 %1406, %v829_v56   ;;  %925 = vperm.xlu0 %1407, %v828_v20  }
 0x21a   : > { %952 = vperm.xlu1 %1406, %v837_v60   ;;  %949 = vperm.xlu0 %1407, %v836_v22  }
 0x21e   : > { %907 = vperm.xlu1 %1406, %v822_v25   ;;  %883 = vperm.xlu0 %1407, %v814_v13  }
 0x222   : > { %955 = vperm.xlu1 %1406, %v838_v26   ;;  %931 = vperm.xlu0 %1407, %v830_v3  }
 0x226   : > { %910 = vperm.xlu1 %1406, %v823_v24   ;;  %886 = vperm.xlu0 %1407, %v815_v5  }
 0x22a   : > { %958 = vperm.xlu1 %1406, %v839_v32   ;;  %934 = vperm.xlu0 %1407, %v831_v1  }
 0x22e   : > { %913 = vperm.xlu1 %1406, %v824_v2   ;;  %889 = vperm.xlu0 %1407, %v816_v14  }
 0x232   : > { %961 = vperm.xlu1 %1406, %v840_v36   ;;  %937 = vperm.xlu0 %1407, %v832_v37  }
 0x236   : > { %916 = vperm.xlu1 %1406, %v825_v39   ;;  %892 = vperm.xlu0 %1407, %v817_v40  }
 0x23a   : > { %964 = vperm.xlu1 %1406, %v841_v18   ;;  %940 = vperm.xlu0 %1407, %v833_v42  }
 0x23e   : > { %919 = vperm.xlu1 %1406, %v826_v15   ;;  %895 = vperm.xlu0 %1407, %v818_v43  }
 0x242   : > { %967 = vperm.xlu1 %1406, %v842_v45   ;;  %943 = vperm.xlu0 %1407, %v834_v46  }
 0x246   : > { %922 = vperm.xlu1 %1406, %v827_v47   ;;  %898 = vperm.xlu0 %1407, %v819_v48  }
 0x24a   : > { %970 = vperm.xlu1 %1406, %v843_v50   ;;  %946 = vperm.xlu0 %1407, %v835_v51  }
 0x289   : > { %v881_v27 = vpop.permute.xlu1 %880  ;;  %v878_v54 = vpop.permute.xlu0 %877 }
 0x28a   : > { %v979_v3 = vrot.slane %v881_v27, %v1919_v21  ;;  %v975_v24 = vrot.slane %v878_v54, %v1919_v21 }
 0x28c   : > { %v1100_v18 = vsel %vm544_vm3, %v979_v3, %v975_v24 }
 0x28d   : > { %v905_v52 = vpop.permute.xlu1 %904  ;;  %v902_v57 = vpop.permute.xlu0 %901 }
 0x28e   : > { %v1011_v5 = vrot.slane %v905_v52, %v1919_v21  ;;  %v1007_v31 = vrot.slane %v902_v57, %v1919_v21 }
 0x290   : > { %v1113_v41 = vsel %vm544_vm3, %v1011_v5, %v1007_v31 }
 0x291   : > { %v929_v63 = vpop.permute.xlu1 %928  ;;  %v926_v0 = vpop.permute.xlu0 %925 }
 0x292   : > { %v1043_v1 = vrot.slane %v929_v63, %v1919_v21  ;;  %v1039_v2 = vrot.slane %v926_v0, %v1919_v21 }
 0x294   : > { %v1120_v44 = vsel %vm544_vm3, %v1043_v1, %v1039_v2 }
 0x295   : > { %v953_v11 = vpop.permute.xlu1 %952  ;;  %v950_v12 = vpop.permute.xlu0 %949 }
 0x296   : > { %v1075_v35 = vrot.slane %v953_v11, %v1919_v21  ;;  %v1071_v14 = vrot.slane %v950_v12, %v1919_v21 }
 0x298   : > { %v1127_v45 = vsel %vm544_vm3, %v1075_v35, %v1071_v14 }
 0x299   : > { %v908_v4 = vpop.permute.xlu1 %907  ;;  %v884_v55 = vpop.permute.xlu0 %883 }
 0x29a   : > { %v1015_v37 = vrot.slane %v908_v4, %v1919_v21  ;;  %v983_v38 = vrot.slane %v884_v55, %v1919_v21 }
 0x29c   : > { %v1114_v49 = vsel %vm1101_vm5, %v1015_v37, %v1113_v41  ;;  %v1102_v50 = vsel %vm1101_vm5, %v983_v38, %v1100_v18 }
 0x29d   : > { %v1975_v16 = vpop.permute.xlu1 %955  ;;  %v932_v17 = vpop.permute.xlu0 %931 }
 0x29e   : > { %v1047_v39 = vrot.slane %v932_v17, %v1919_v21  ;;  %v1079_v54 = vrot.slane %v1975_v16, %v1919_v21 }
 0x2a0   : > { %v1121_v52 = vsel %vm1101_vm5, %v1047_v39, %v1120_v44  ;;  %v1128_v2 = vsel %vm1101_vm5, %v1079_v54, %v1127_v45 }
 0x2a1   : > { %v911_v56 = vpop.permute.xlu1 %910  ;;  %v887_v19 = vpop.permute.xlu0 %886 }
 0x2a2   : > { %v1019_v40 = vrot.slane %v911_v56, %v1919_v21  ;;  %v987_v42 = vrot.slane %v887_v19, %v1919_v21 }
 0x2a4   : > { %v1115_v57 = vsel %vm1103_vm6, %v1019_v40, %v1114_v49  ;;  %v1104_v0 = vsel %vm1103_vm6, %v987_v42, %v1102_v50 }
 0x2a5   : > { %v1977_v20 = vpop.permute.xlu1 %958  ;;  %v1979_v62 = vpop.permute.xlu0 %934 }
 0x2a6   : > { %v1083_v11 = vrot.slane %v1977_v20, %v1919_v21  ;;  %v1051_v12 = vrot.slane %v1979_v62, %v1919_v21 }
 0x2a8   : > { %v1122_v5 = vsel %vm1103_vm6, %v1051_v12, %v1121_v52  ;;  %v1129_v37 = vsel %vm1103_vm6, %v1083_v11, %v1128_v2  ;;  %v1187_v2 = vld [vmem:[%s1762_s7 + $0x20] sm:$0xff] }
 0x2a9   : > { %v914_v8 = vpop.permute.xlu1 %913  ;;  %v890_v60 = vpop.permute.xlu0 %889 }
 0x2aa   : > { %v1023_v15 = vrot.slane %v914_v8, %v1919_v21  ;;  %v991_v46 = vrot.slane %v890_v60, %v1919_v21 }
 0x2ac   : > { %v1116_v4 = vsel %vm1105_vm7, %v1023_v15, %v1115_v57  ;;  %v1106_v17 = vsel %vm1105_vm7, %v991_v46, %v1104_v0 }
 0x2ad   : > { %v1981_v22 = vpop.permute.xlu1 %961  ;;  %v1983_v23 = vpop.permute.xlu0 %937 }
 0x2ae   : > { %v1055_v16 = vrot.slane %v1983_v23, %v1919_v21 }
 0x2b1   : > { %v917_v25 = vpop.permute.xlu1 %916  ;;  %v893_v13 = vpop.permute.xlu0 %892 }
 0x2b2   : > { %v1027_v47 = vrot.slane %v917_v25, %v1919_v21  ;;  %v995_v51 = vrot.slane %v893_v13, %v1919_v21  ;;  %v1087_v13 = vrot.slane %v1981_v22, %v1919_v21  ;;  %v1123_v22 = vsel %vm1105_vm7, %v1055_v16, %v1122_v5 }
 0x2b3   : > { %v352_v5 = vmul.f32 %v1909_v59, %v1778_v6 }
 0x2b4   : > { %v1117_v56 = vsel %vm1107_vm8, %v1027_v47, %v1116_v4  ;;  %v1108_v60 = vsel %vm1107_vm8, %v995_v51, %v1106_v17  ;;  %v1130_v40 = vsel %vm1105_vm7, %v1087_v13, %v1129_v37  ;;  %v348_v4 = vmul.f32 %v1907_v58, %v1784_v9  ;;  %v1184_v13 = vld [vmem:[%s1762_s7 + $0x8] sm:$0xff] }
 0x2b5   : > { %v1985_v26 = vpop.permute.xlu1 %964  ;;  %v1987_v28 = vpop.permute.xlu0 %940 }
 0x2b6   : > { %v1059_v20 = vrot.slane %v1987_v28, %v1919_v21  ;;  %v1091_v31 = vrot.slane %v1985_v26, %v1919_v21  ;;  %v376_v17 = vadd.f32 %v1913_v61, %v348_v4 }
 0x2b8   : > { %v1124_v38 = vsel %vm1107_vm8, %v1059_v20, %v1123_v22  ;;  %v1131_v41 = vsel %vm1107_vm8, %v1091_v31, %v1130_v40  ;;  %v353_v31 = vmul.f32 %v1909_v59, %v1780_v7 }
 0x2b9   : > { %v920_v32 = vpop.permute.xlu1 %919  ;;  %v896_v36 = vpop.permute.xlu0 %895 }
 0x2ba   : > { %v1031_v27 = vrot.slane %v920_v32, %v1919_v21  ;;  %v999_v63 = vrot.slane %v896_v36, %v1919_v21 }
 0x2bc   : > { %v1118_v25 = vsel %vm1109_vm9, %v1031_v27, %v1117_v56  ;;  %v1110_v24 = vsel %vm1109_vm9, %v999_v63, %v1108_v60 }
 0x2bd   : > { %v968_v43 = vpop.permute.xlu1 %967  ;;  %v944_v48 = vpop.permute.xlu0 %943 }
 0x2be   : > { %v1063_v3 = vrot.slane %v944_v48, %v1919_v21  ;;  %v1095_v35 = vrot.slane %v968_v43, %v1919_v21 }
 0x2c0   : > { %v1125_v18 = vsel %vm1109_vm9, %v1063_v3, %v1124_v38  ;;  %v1132_v43 = vsel %vm1109_vm9, %v1095_v35, %v1131_v41  ;;  %v1189_v38 = vld [vmem:[%s1762_s7 + $0x30] sm:$0xff] }
 0x2c1   : > { %v923_v55 = vpop.permute.xlu1 %922  ;;  %v899_v8 = vpop.permute.xlu0 %898 }
 0x2c2   : > { %v1035_v19 = vrot.slane %v923_v55, %v1919_v21  ;;  %v1003_v62 = vrot.slane %v899_v8, %v1919_v21  ;;  %v349_v55 = vmul.f32 %v1907_v58, %v1786_v10  ;;  %v1186_v8 = vld [vmem:[%s1762_s7 + $0x18] sm:$0xff] }
 0x2c4   : > { %v1119_v23 = vsel %vm1111_vm10, %v1035_v19, %v1118_v25  ;;  %v1112_v1 = vsel %vm1111_vm10, %v1003_v62, %v1110_v24  ;;  %v377_v16 = vadd.f32 %v1913_v61, %v349_v55  ;;  %v1185_v19 = vld [vmem:[%s1762_s7 + $0x10] sm:$0xff]  ;;  %v1183_v25 = vld [vmem:[%s1762_s7] sm:$0xff] }
 0x2c5   : > { %v971_v32 = vpop.permute.xlu1 %970  ;;  %v1142_v28 = vsel %vm1138_vm11, %v1119_v23, 0.0  ;;  %v947_v14 = vpop.permute.xlu0 %946  ;;  %v1139_v36 = vsel %vm1138_vm11, %v1112_v1, 0.0 }
 0x2c6   : > { %1143 = vadd.xlane.f32.xlu1 %v1142_v28  ;;  %v1099_v26 = vrot.slane %v971_v32, %v1919_v21  ;;  %v1067_v39 = vrot.slane %v947_v14, %v1919_v21  ;;  %1140 = vadd.xlane.f32.xlu0 %v1139_v36 }
 0x2c8   : > { %v1126_v42 = vsel %vm1111_vm10, %v1067_v39, %v1125_v18  ;;  %v1133_v44 = vsel %vm1111_vm10, %v1099_v26, %v1132_v43  ;;  %v1190_v26 = vld [vmem:[%s1762_s7 + $0x38] sm:$0xff] }
 0x2c9   : > { %v1145_v15 = vsel %vm1138_vm11, %v1126_v42, 0.0  ;;  %v1148_v45 = vsel %vm1138_vm11, %v1133_v44, 0.0 }
 0x2ca   : > { %1146 = vadd.xlane.f32.xlu0 %v1145_v15 }
 0x2ce   : > { %1149 = vadd.xlane.f32.xlu0 %v1148_v45 }
 0x2d7   : > { %371 = vperm.xlu1 %1406, %v1837_v53  }
 0x34f   : > { %v1144_v21 = vpop.xlane.xlu1 %1143  ;;  %v1141_v47 = vpop.xlane.xlu0 %1140 }
 0x350   : > { %v1339_v46 = vmul.f32 -1.442695, %v1144_v21  ;;  %v1338_v48 = vmul.f32 -1.442695, %v1141_v47 }
 0x352   : > { %1408 = vpow2.f32 %v1339_v46 }
 0x353   : > { %1410 = vpow2.f32 %v1338_v48  ;;  %v1147_v49 = vpop.xlane.xlu0 %1146  ;;  %v372_v1 = vpop.permute.xlu1 %371 }
 0x354   : > { %v1340_v50 = vmul.f32 -1.442695, %v1147_v49  ;;  %v380_v6 = vadd.f32 %v372_v1, %v352_v5  ;;  %v381_v7 = vadd.f32 %v372_v1, %v353_v31 }
 0x356   : > { %1412 = vpow2.f32 %v1340_v50 }
 0x357   : > { %v1150_v51 = vpop.xlane.xlu0 %1149 }
 0x358   : > { %v1341_v27 = vmul.f32 -1.442695, %v1150_v51 }
 0x35a   : > { %1414 = vpow2.f32 %v1341_v27 }
 0x35f   : > { %v1409_v54 = vpop.eup %1408 }
 0x360   : > { %v1411_v52 = vpop.eup %1410  ;;  %v1164_v57 = vadd.f32 1.0, %v1409_v54 }
 0x361   : > { %v1163_v63 = vadd.f32 1.0, %v1411_v52 }
 0x362   : > { %1416 = vrcp.f32 %v1164_v57 }
 0x363   : > { %1418 = vrcp.f32 %v1163_v63  ;;  %v1413_v53 = vpop.eup %1412 }
 0x364   : > { %v1165_v0 = vadd.f32 1.0, %v1413_v53 }
 0x366   : > { %1420 = vrcp.f32 %v1165_v0 }
 0x367   : > { %v1415_v11 = vpop.eup %1414 }
 0x368   : > { %v1166_v12 = vadd.f32 1.0, %v1415_v11 }
 0x36a   : > { %1422 = vrcp.f32 %v1166_v12 }
 0x36f   : > { %v1417_v56 = vpop.eup %1416 }
 0x370   : > { %v1419_v60 = vpop.eup %1418  ;;  %v1177_v20 = vmul.f32 %v1417_v56, %v376_v17  ;;  %v1178_v62 = vmul.f32 %v1417_v56, %v377_v16 }
 0x371   : > { %v1175_v9 = vmul.f32 %v1419_v60, %v1871_v29  ;;  %v1176_v3 = vmul.f32 %v1419_v60, %v1873_v30  ;;  %v1188_v29 = vld [vmem:[%s1762_s7 + $0x28] sm:$0xff]  ;;  %s1480_s7 = scalar_lea.vmem %s2090_s12, 1024 }
 0x372   : > { %v1193_v10 = vadd.f32 %v1185_v19, %v1177_v20  ;;  %v1194_v58 = vadd.f32 %v1186_v8, %v1178_v62  ;;  %p1481_p13 = scmp.ne.s32.totalorder %s2090_s12, %s1480_s7  ;;  %p1488_p0 = scmp.lt.s32.totalorder %s1486_s28, %s1480_s7 }
 0x373   : > { %v1191_v23 = vadd.f32 %v1183_v25, %v1175_v9  ;;  %v1192_v24 = vadd.f32 %v1184_v13, %v1176_v3  ;;  %v1421_v61 = vpop.eup %1420 }
 0x374   : > { %v1201_v32 = vmax.f32 %v1193_v10, 0.0  ;;  %v1202_v28 = vmax.f32 %v1194_v58, 0.0  ;;  %v1179_v35 = vmul.f32 %v1421_v61, %v1877_v33  ;;  %v1180_v14 = vmul.f32 %v1421_v61, %v1879_v34  ;;  %p1482_p12 = pnand %p1481_p13, %p2155_p1  ;;  %p1489_p2 = por %p1488_p0, %p1487_p10 }
 0x375   : > { %v1199_v30 = vmax.f32 %v1191_v23, 0.0  ;;  %v1200_v22 = vmax.f32 %v1192_v24, 0.0 }
 0x376   : > { %1209 = vst [vmem:[%s309_s8 + $0x10] sm:$0xff] %v1201_v32  ;;  %1210 = vst [vmem:[%s309_s8 + $0x18] sm:$0xff] %v1202_v28  ;;  %v1195_v59 = vadd.f32 %v1187_v2, %v1179_v35  ;;  %v1196_v36 = vadd.f32 %v1188_v29, %v1180_v14  ;;  %p1483_p7 = pneg %p1482_p12 }
 0x377   : > { %1207 = vst [vmem:[%s309_s8] sm:$0xff] %v1199_v30  ;;  %1208 = vst [vmem:[%s309_s8 + $0x8] sm:$0xff] %v1200_v22  ;;  %v1423_v37 = vpop.eup %1422 }
 0x378   : > { %v1203_v39 = vmax.f32 %v1195_v59, 0.0  ;;  %v1204_v40 = vmax.f32 %v1196_v36, 0.0  ;;  %v1181_v18 = vmul.f32 %v1423_v37, %v380_v6  ;;  %v1182_v33 = vmul.f32 %v1423_v37, %v381_v7  ;;  %p1490_p4 = pnand %p1489_p2, %p1483_p7 }
 0x37a   : > { %1211 = vst [vmem:[%s309_s8 + $0x20] sm:$0xff] %v1203_v39  ;;  %1212 = vst [vmem:[%s309_s8 + $0x28] sm:$0xff] %v1204_v40  ;;  %v1197_v34 = vadd.f32 %v1189_v38, %v1181_v18  ;;  %v1198_v41 = vadd.f32 %v1190_v26, %v1182_v33 }
 0x37c   : > { %v1205_v42 = vmax.f32 %v1197_v34, 0.0  ;;  %v1206_v15 = vmax.f32 %v1198_v41, 0.0 }
 0x37e   : > { %1213 = vst [vmem:[%s309_s8 + $0x30] sm:$0xff] %v1205_v42  ;;  %1214 = vst [vmem:[%s309_s8 + $0x38] sm:$0xff] %v1206_v15 }
 0x37f   : > { %1493 = shalt.err (!%p1490_p4)
}
 0x380   : > { %s1494_s29 = scalar_lea.hbm %s2088_s15, 1024  ;;  %s1498_s19 = scalar_lea.hbm %s2139_s6, 2048 }
 0x381   : > { %p1495_p9 = scmp.ne.s32.totalorder %s2088_s15, %s1494_s29  ;;  %p1499_p5 = scmp.lt.s32.totalorder %s2088_s15, %s2139_s6 }
 0x382   : > { %p1500_p8 = scmp.lt.s32.totalorder %s1498_s19, %s1494_s29 }
 0x383   : > { %p1496_p11 = pnand %p1495_p9, %p2155_p1 }
 0x384   : > { %p1501_p6 = por %p1500_p8, %p1499_p5 }
 0x385   : > { %p1497_p3 = pneg %p1496_p11 }
 0x387   : > { %p1502_p13 = pnand %p1501_p6, %p1497_p3 }
 0x389   : > { %1505 = shalt.err (!%p1502_p13)
}
 0x38a   : > { %s1556_s13 = smov 256   ;;  %s1557_s17 = smov 16  }
 0x38b   : > { %1354 = dma.vmem_to_hbm [thread:$0]  (%p2155_p1), %s2090_s12, 1024, %s2088_s15, %s1216_s25, %s1556_s13, %s1556_s13, %s1557_s17  }
 0x38c PF: > { %s1244_s16 = sand.u32 1, %s1536_s21   ;;  %p2156_p12 = scmp.ne.s32.totalorder %s2148_s10, 0 }
 0x38d   : > { %p2157_p7 = scmp.ge.s32.totalorder %s1548_s24, 2  ;;  %s1245_s7 = scalar_lea.sflag [#allocation4], %s1244_s16 }
 0x38f   : > { %p1364_p10 = pnand %p2157_p7, %p2156_p12 }
 0x391   : > { %p1365_p0 = pneg %p1364_p10 }
 0x393   : > { %1531 = dma.done.wait (%p1365_p0), %s1245_s7, 1024  }
 0x394   : > { %1533 = vsyncadd (%p1365_p0), %s1245_s7, 4294966272  ;;  %p22_p2 = scmp.ge.s32.totalorder %s1618_s27, 4   ;;  %s2158_s21 = smov %s1540_s22 }
 0x395   : > { %s2159_s22 = smov %s1544_s23  ;;  %s2160_s23 = smov %s1630_s30 }
 0x396   : > { %s2161_s24 = smov %s1618_s27  ;;  %24 = sbr.rel (!%p22_p2) target bundleno = 9 (0x9), region = 102 }
 0x39b   :  { %1250 = vsyncpa [#allocation3], 1 }
 0x39c   :  { %1252 = vsyncpa [#allocation3 + $0x1], 1 }
 0x39d   :  { %1253 = vsyncpa [#allocation6], 1 }
 0x39e   :  { %1255 = vsyncpa [#allocation6 + $0x1], 1 }
 0x39f   :  { %1256 = vsyncpa [#allocation4], 1 }
 0x3a0   :  { %1258 = vsyncpa [#allocation4 + $0x1], 1 }

// kernel: tpu_custom_call.1
= control target key start
LH: loop header
LB: loop body
LE: loop exit
PB: predicated region body
PF: predicated region fallthrough
CT: control target
= control target key end

     0   :  { %s2133_s0 = inlined_call_operand.hbm [shape: f32[2,32,256], index: 0, kind: input, shape index: {}]   ;;  %s2134_s1 = inlined_call_operand.hbm [shape: f32[2,32,256], index: 1, kind: input, shape index: {}]   ;;  %s2135_s2 = inlined_call_operand.vmem [shape: f32[32,1], index: 2, kind: input, shape index: {}]   ;;  %s2136_s3 = inlined_call_operand.vmem [shape: f32[32,1], index: 3, kind: input, shape index: {}]   ;;  %s2137_s4 = inlined_call_operand.vmem [shape: f32[2,32], index: 4, kind: input, shape index: {}]   ;;  %s2138_s5 = inlined_call_operand.vmem [shape: f32[32,2], index: 5, kind: input, shape index: {}]   ;;  %s2139_s6 = inlined_call_operand.hbm [shape: f32[2,32,256], index: 6, kind: output, shape index: {}]  }
   0x1   :  { %2144 = sst [smem:[#allocation11_spill]] %s2133_s0 }
   0x2   :  { %11 = vsyncpa [#allocation3], 0 }
   0x3   :  { %13 = vsyncpa [#allocation3 + $0x1], 0 }
   0x4   :  { %14 = vsyncpa [#allocation6], 0 }
   0x5   :  { %16 = vsyncpa [#allocation6 + $0x1], 0 }
   0x6   :  { %17 = vsyncpa [#allocation4], 0 }
   0x7   :  { %19 = vsyncpa [#allocation4 + $0x1], 0  ;;  %s1593_s21 = smov 0   ;;  %s1595_s22 = smov 0  }
   0x8   :  { %s1597_s23 = smov 0   ;;  %s1599_s24 = smov 0  }
   0x9 LB: > { %s1614_s25 = sadd.s32 4294967295, %s1548_s24   ;;  %s1325_s26 = sadd.s32 4294967294, %s1548_s24   ;;  %s1548_s24 = sphi %s1599_s24, %s2161_s24   ;;  %s1544_s23 = sphi %s1597_s23, %s2160_s23   ;;  %s1540_s22 = sphi %s1595_s22, %s2159_s22   ;;  %s1536_s21 = sphi %s1593_s21, %s2158_s21  }
   0xa   : > { %s1618_s27 = sadd.s32 1, %s1548_s24   ;;  %s32_s28 = sadd.s32 1, %s1544_s23 }
   0xb   : > { %s29_s29 = ssub.s32 %s1548_s24, %s1618_s27  ;;  %p39_p0 = scmp.ne.s32.totalorder %s1544_s23, %s1540_s22 }
   0xc   : > { %p30_p1 = scmp.eq.s32.totalorder %s29_s29, 0  ;;  %p40_p2 = scmp.eq.s32.totalorder %s1548_s24, 0 }
   0xd   : > { %p45_p3 = scmp.ne.s32.totalorder %s1540_s22, %s1536_s21  ;;  %p46_p4 = scmp.eq.s32.totalorder %s1614_s25, 0 }
   0xe   : > { %s1630_s30 = scalar_select %p30_p1, %s1544_s23, %s32_s28  }
   0xf   : > { %p1632_p5 = por %p40_p2, %p39_p0  ;;  %p1636_p6 = por %p46_p4, %p45_p3 }
  0x10   : > { %p179_p7 = scmp.eq.s32.totalorder %s1614_s25, 1  ;;  %p185_p8 = scmp.eq.s32.totalorder %s1325_s26, 1 }
  0x11   : > { %s2146_s8 = scalar_select %p1636_p6, 1, 0 }
  0x12   : > { %p1367_p10 = scmp.lt.s32.totalorder %s1548_s24, 2  ;;  %p1643_p11 = por %p179_p7, %p39_p0 }
  0x13   : > { %p1647_p12 = por %p185_p8, %p45_p3  ;;  %s1652_s11 = sand.u32 1, %s1544_s23  }
  0x14   : > { %s2147_s9 = scalar_select %p1643_p11, 1, 0 }
  0x15   : > { %s2148_s10 = scalar_select %p1647_p12, 1, 0 }
  0x16   : > { %s1347_s12 = sshll.u32 %s1548_s24, 10  ;;  %s2140_s13 = sshll.u32 %s1652_s11, 6 }
  0x17   : > { %s2149_s0 = sld [smem:[#allocation11_spill]]  ;;  %s221_s17 = scalar_lea.vmem [#allocation2], %s2140_s13 }
  0x18   : > { %s228_s18 = sshll.u32 %s221_s17, 4  ;;  %p1667_p13 = pnand %p1367_p10, %p1632_p5  ;;  %s1671_s18 = int_to_ptr.vmem [resolvable:$true] %s228_s18 }
  0x19   : > { %s218_s20 = scalar_lea.sflag [#allocation3], %s1652_s11 }
  0x1a   : > { %p1426_p1 = pneg %p1667_p13 }
  0x1d   : > { %s1661_s16 = scalar_lea.hbm %s2149_s0, %s1347_s12  ;;  %s1429_s7 = scalar_lea.hbm %s2149_s0, 2048 }
  0x1e   : > { %s1424_s26 = scalar_lea.hbm %s1661_s16, 1024  ;;  %p1430_p4 = scmp.lt.s32.totalorder %s1661_s16, %s2149_s0 }
  0x1f   : > { %p1425_p0 = scmp.ne.s32.totalorder %s1661_s16, %s1424_s26  ;;  %p1431_p5 = scmp.lt.s32.totalorder %s1429_s7, %s1424_s26 }
  0x21   : > { %p1427_p2 = pnand %p1426_p1, %p1425_p0  ;;  %p1432_p7 = por %p1431_p5, %p1430_p4 }
  0x23   : > { %p1428_p3 = pneg %p1427_p2 }
  0x25   : > { %p1433_p8 = pnand %p1432_p7, %p1428_p3 }
  0x27   : > { %1436 = shalt.err (!%p1433_p8)
}
  0x28   : > { %s1437_s17 = scalar_lea.vmem %s1671_s18, 1024  ;;  %s1550_s28 = smov [#allocation2]  }
  0x29   : > { %p1438_p10 = scmp.ne.s32.totalorder %s1671_s18, %s1437_s17  ;;  %s1442_s29 = sshll.u32 %s1550_s28, 4  ;;  %s1443_s29 = int_to_ptr.vmem [resolvable:$false] %s1442_s29 }
  0x2a   : > { %s1444_s13 = scalar_lea.vmem %s1443_s29, 2048  ;;  %p1445_p9 = scmp.lt.s32.totalorder %s1671_s18, %s1443_s29 }
  0x2b   : > { %p1440_p0 = pnand %p1438_p10, %p1426_p1  ;;  %p1446_p12 = scmp.lt.s32.totalorder %s1444_s13, %s1437_s17 }
  0x2d   : > { %p1441_p2 = pneg %p1440_p0  ;;  %p1447_p11 = por %p1446_p12, %p1445_p9 }
  0x2f   : > { %p1448_p4 = pnand %p1447_p11, %p1441_p2 }
  0x31   : > { %1451 = shalt.err (!%p1448_p4)
}
  0x32   : > { %s2142_s26 = smov 256   ;;  %s1552_s7 = smov 16  }
  0x33   : > { %1359 = dma.hbm_to_vmem [thread:$0]  (!%p1667_p13), %s1661_s16, 1024, %s1671_s18, %s218_s20, %s2142_s26, %s2142_s26, %s1552_s7  }
  0x34   : > { %p1334_p9 = scmp.ge.s32.totalorder %s1548_s24, 1  ;;  %p257_p11 = scmp.lt.s32.totalorder %s1548_s24, 3 }
  0x35   : > { %s1714_s17 = scalar_lea.hbm %s2134_s1, %s1347_s12  ;;  %s2152_s28 = sshll.u32 %s1652_s11, 6 }
  0x36   : > { %p1705_p12 = pnand %p1334_p9, %p257_p11  ;;  %s242_s29 = scalar_lea.vmem [#allocation5], %s2152_s28 }
  0x37   : > { %s249_s0 = sshll.u32 %s242_s29, 4  ;;  %s239_s16 = scalar_lea.sflag [#allocation6], %s1652_s11  ;;  %s1718_s0 = int_to_ptr.vmem [resolvable:$true] %s249_s0 }
  0x38   : > { %s1452_s18 = scalar_lea.hbm %s1714_s17, 1024  ;;  %s1457_s12 = scalar_lea.hbm %s2134_s1, 2048 }
  0x39   : > { %p1453_p3 = scmp.ne.s32.totalorder %s1714_s17, %s1452_s18  ;;  %p1458_p8 = scmp.lt.s32.totalorder %s1714_s17, %s2134_s1 }
  0x3a   : > { %p1459_p10 = scmp.lt.s32.totalorder %s1457_s12, %s1452_s18 }
  0x3b   : > { %p1455_p5 = pnand %p1453_p3, %p1426_p1 }
  0x3c   : > { %p1460_p0 = por %p1459_p10, %p1458_p8 }
  0x3d   : > { %p1456_p7 = pneg %p1455_p5 }
  0x3f   : > { %p1461_p2 = pnand %p1460_p0, %p1456_p7 }
  0x41   : > { %1464 = shalt.err (!%p1461_p2)
}
  0x42   : > { %s1465_s11 = scalar_lea.vmem %s1718_s0, 1024  ;;  %s1553_s26 = smov [#allocation5]  }
  0x43   : > { %p1466_p4 = scmp.ne.s32.totalorder %s1718_s0, %s1465_s11  ;;  %s1470_s28 = sshll.u32 %s1553_s26, 4  ;;  %s1471_s28 = int_to_ptr.vmem [resolvable:$false] %s1470_s28 }
  0x44   : > { %s1472_s29 = scalar_lea.vmem %s1471_s28, 2048  ;;  %p1473_p3 = scmp.lt.s32.totalorder %s1718_s0, %s1471_s28 }
  0x45   : > { %p1468_p9 = pnand %p1466_p4, %p1426_p1  ;;  %p1474_p5 = scmp.lt.s32.totalorder %s1472_s29, %s1465_s11 }
  0x47   : > { %p1469_p11 = pneg %p1468_p9  ;;  %p1475_p6 = por %p1474_p5, %p1473_p3 }
  0x49   : > { %p1476_p8 = pnand %p1475_p6, %p1469_p11 }
  0x4b   : > { %1479 = shalt.err (!%p1476_p8)
}
  0x4c   : > { %s2153_s18 = smov 256   ;;  %261 = sbr.rel (%p1705_p12) target bundleno = 908 (0x38c), region = 44 }
  0x4d   : > { %1362 = dma.hbm_to_vmem [thread:$0]  (!%p1667_p13), %s1714_s17, 1024, %s1718_s0, %s239_s16, %s2153_s18, %s2153_s18, %s1552_s7  }
  0x4e   : > { %s1749_s20 = sand.u32 (!%p1705_p12), 1, %s1540_s22   ;;  %p2154_p6 = scmp.ne.s32.totalorder (!%p1705_p12), %s2146_s8, 0 }
  0x4f   : > { %s1752_s12 = sshll.u32 (!%p1705_p12), %s1749_s20, 6  ;;  %s264_s14 = scalar_lea.sflag (!%p1705_p12), [#allocation3], %s1749_s20 }
  0x50   : > { %s267_s19 = scalar_lea.vmem (!%p1705_p12), [#allocation2], %s1752_s12 }
  0x51   : > { %1523 = dma.done.wait (%p2154_p6), %s264_s14, 1024  }
  0x52   : > { %1525 = vsyncadd (%p2154_p6), %s264_s14, 4294966272  ;;  %s273_s0 = scalar_lea.sflag [#allocation6], %s1749_s20  ;;  %s1762_s7 = scalar_lea.vmem [#allocation5], %s1752_s12 }
  0x53   : > { %1527 = dma.done.wait (%p2154_p6), %s273_s0, 1024  }
  0x54   : > { %1529 = vsyncadd (%p2154_p6), %s273_s0, 4294966272  ;;  %v1554_v0 = vmov 0   ;;  %v1768_v1 = vld [vmem:[%s267_s19 + $0x20] sm:$0xff]  ;;  %v1770_v2 = vld [vmem:[%s267_s19 + $0x28] sm:$0xff]  ;;  %v412_v13 = vlaneseq  ;;  %vm509_vm0 = vcmask 130112   ;;  %vm516_vm1 = vcmask 195712  }
  0x55   : > { %1406 = vset.pattern.permute.xlu1 %v1554_v0  ;;  %1407 = vset.pattern.permute.xlu0 %v1554_v0  ;;  %v1772_v3 = vld [vmem:[%s267_s19] sm:$0xff]  ;;  %v388_v4 = vadd.f32 %v1770_v2, %v1768_v1  ;;  %v1776_v5 = vld [vmem:[%s267_s19 + $0x8] sm:$0xff]  ;;  %v1778_v6 = vld [vmem:[%s267_s19 + $0x30] sm:$0xff]  ;;  %vm523_vm2 = vcmask 261312   ;;  %vm544_vm3 = vcmask 1041409   ;;  %vm547_vm4 = vcmask 254976  }
  0x56   : > { %v1780_v7 = vld [vmem:[%s267_s19 + $0x38] sm:$0xff]  ;;  %v382_v8 = vadd.f32 %v1776_v5, %v1772_v3  ;;  %v1784_v9 = vld [vmem:[%s267_s19 + $0x10] sm:$0xff]  ;;  %v1793_v14 = vshrl.u32 %v412_v13, 7  ;;  %v406_v16 = vld [vmem:[%s2137_s4] sm:$0x3]  ;;  %vm1101_vm5 = vcmask 1042434  }
  0x57   : > { %v1786_v10 = vld [vmem:[%s267_s19 + $0x18] sm:$0xff]  ;;  %389 = vadd.xlane.f32.xlu1 %v388_v4  ;;  %v391_v11 = vadd.f32 %v1780_v7, %v1778_v6  ;;  %v319_v20 = vld [vmem:[%s2135_s2 + $0x8] sm:$0xff]  ;;  %v318_v21 = vld [vmem:[%s2135_s2] sm:$0xff]  ;;  %vm1103_vm6 = vcmask 1043459   ;;  %vm1105_vm7 = vcmask 1044484   ;;  %vm1107_vm8 = vcmask 1045509  }
  0x58   : > { %383 = vadd.xlane.f32.xlu0 %v382_v8  ;;  %v385_v12 = vadd.f32 %v1786_v10, %v1784_v9  ;;  %v1796_v15 = vsub.s32 0, %v1793_v14  ;;  %v1803_v18 = vsub.s32 1, %v1793_v14  ;;  %v321_v22 = vld [vmem:[%s2135_s2 + $0x18] sm:$0xff]  ;;  %v320_v23 = vld [vmem:[%s2135_s2 + $0x10] sm:$0xff]  ;;  %v323_v24 = vld [vmem:[%s2136_s3 + $0x8] sm:$0xff]  ;;  %v1850_v0 = vsub.s32 3, %v1793_v14 }
  0x59   : > { %v322_v25 = vld [vmem:[%s2136_s3] sm:$0xff]  ;;  %v324_v26 = vld [vmem:[%s2136_s3 + $0x10] sm:$0xff]  ;;  %v1837_v53 = vld [vmem:[%s2136_s3 + $0x18] sm:$0xff]  ;;  %vm1109_vm9 = vcmask 1046534   ;;  %vm1111_vm10 = vcmask 1047559   ;;  %vm1138_vm11 = vcmask 15360  }
  0x5a   : > { %v415_v17 = vrot.slane %v406_v16, %v1796_v15  ;;  %v434_v19 = vrot.slane %v406_v16, %v1803_v18  ;;  %v1830_v27 = vld [vmem:[%s2138_s5] sm:$0xff]  ;;  %v1842_v56 = vld [vmem:[%s2138_s5 + $0x18] sm:$0xff]  ;;  %v1855_v4 = vld [vmem:[%s2138_s5 + $0x8] sm:$0xff]  ;;  %s309_s8 = scalar_lea.vmem [#allocation7], %s1752_s12  ;;  %s1349_s13 = sshll.u32 %s1614_s25, 10 }
  0x5b   : > { %392 = vadd.xlane.f32.xlu1 %v391_v11  ;;  %v559_v28 = vrot.slane %v1830_v27, %v1796_v15  ;;  %v734_v60 = vrot.slane %v1842_v56, %v1803_v18  ;;  %v566_v63 = vrot.slane %v1830_v27, %v1803_v18  ;;  %v409_v8 = vld [vmem:[%s2138_s5 + $0x10] sm:$0xff]  ;;  %v615_v16 = vrot.slane %v1855_v4, %v1796_v15  ;;  %s1229_s12 = sshll.u32 %s309_s8, 4  ;;  %s2088_s15 = scalar_lea.hbm %s2139_s6, %s1349_s13  ;;  %s2090_s12 = int_to_ptr.vmem [resolvable:$true] %s1229_s12 }
  0x5c   : > { %386 = vadd.xlane.f32.xlu0 %v385_v12  ;;  %s1216_s25 = scalar_lea.sflag [#allocation4], %s1749_s20  ;;  %p2155_p1 = scmp.ne.s32.totalorder %s2147_s9, 0 }
  0x5d   : > { %s1555_s11 = smov [#allocation7]  }
  0x5e   : > { %s1484_s26 = sshll.u32 %s1555_s11, 4  ;;  %s1485_s26 = int_to_ptr.vmem [resolvable:$false] %s1484_s26 }
  0x5f   : > { %s1486_s28 = scalar_lea.vmem %s1485_s26, 2048  ;;  %p1487_p10 = scmp.lt.s32.totalorder %s2090_s12, %s1485_s26 }
  0x6c   : > { %421 = vbcast.lane.b32.xlu1 %v415_v17, 264 }
  0x70   : > { %436 = vbcast.lane.b32.xlu1 %v434_v19, 256 }
  0x72   : > { %417 = vbcast.lane.b32.xlu0 %v415_v17, 256 }
  0x74   : > { %440 = vbcast.lane.b32.xlu1 %v434_v19, 264 }
  0x76   : > { %425 = vbcast.lane.b32.xlu0 %v415_v17, 272 }
  0x78   : > { %444 = vbcast.lane.b32.xlu1 %v434_v19, 272 }
  0x7a   : > { %429 = vbcast.lane.b32.xlu0 %v415_v17, 280  ;;  %v692_v17 = vrot.slane %v409_v8, %v1850_v0 }
  0x7c   : > { %448 = vbcast.lane.b32.xlu1 %v434_v19, 280  ;;  %v586_v19 = vsub.s32 4, %v1793_v14 }
  0x7e   : > { %333 = vperm.xlu0 %1407, %v319_v20  }
  0x80   : > { %328 = vperm.xlu1 %1406, %v318_v21  }
  0x82   : > { %343 = vperm.xlu0 %1407, %v321_v22  }
  0x84   : > { %338 = vperm.xlu1 %1406, %v320_v23  }
  0x86   : > { %361 = vperm.xlu0 %1407, %v323_v24  }
  0x88   : > { %356 = vperm.xlu1 %1406, %v322_v25  }
  0x8c   : > { %366 = vperm.xlu1 %1406, %v324_v26  }
  0x90   : > { %561 = vbcast.lane.b32.xlu1 %v559_v28, 256 }
  0xe0   : > { %v390_v29 = vpop.xlane.xlu1 %389 }
  0xe1   : > { %v384_v30 = vpop.xlane.xlu0 %383  ;;  %v396_v40 = vmul.f32 0.00390625, %v390_v29 }
  0xe2   : > { %v394_v31 = vmul.f32 0.00390625, %v384_v30 }
  0xe3   : > { %v400_v45 = vmul.f32 %v396_v40, %v320_v23  ;;  %v622_v23 = vrot.slane %v1855_v4, %v1803_v18 }
  0xe4   : > { %v398_v32 = vmul.f32 %v394_v31, %v318_v21  ;;  %v393_v33 = vpop.xlane.xlu1 %392  ;;  %v593_v31 = vsub.s32 5, %v1793_v14 }
  0xe5   : > { %v387_v34 = vpop.xlane.xlu0 %386  ;;  %v397_v46 = vmul.f32 0.00390625, %v393_v33  ;;  %v404_v52 = vadd.f32 %v400_v45, %v324_v26 }
  0xe6   : > { %v395_v35 = vmul.f32 0.00390625, %v387_v34  ;;  %v402_v36 = vadd.f32 %v398_v32, %v322_v25 }
  0xe7   : > { %v401_v51 = vmul.f32 %v397_v46, %v321_v22  ;;  %v580_v46 = vrot.slane %v1830_v27, %v1850_v0 }
  0xe8   : > { %v399_v37 = vmul.f32 %v395_v35, %v319_v20  ;;  %v422_v38 = vpop.permute.xlu1 %421  ;;  %v727_v35 = vrot.slane %v1842_v56, %v1796_v15 }
  0xe9   : > { %v418_v39 = vpop.permute.xlu0 %417  ;;  %v405_v59 = vadd.f32 %v401_v51, %v1837_v53  ;;  %v650_v51 = vrot.slane %v1855_v4, %v593_v31 }
  0xea   : > { %v403_v41 = vadd.f32 %v399_v37, %v323_v24  ;;  %v458_v42 = vmul.f32 %v418_v39, %v402_v36  ;;  %v587_v24 = vrot.slane %v1830_v27, %v586_v19  ;;  %v706_v37 = vrot.slane %v409_v8, %v593_v31 }
  0xec   : > { %v459_v43 = vmul.f32 %v422_v38, %v403_v41  ;;  %475 = vperm.xlu0 %1407, %v458_v42   ;;  %v437_v44 = vpop.permute.xlu1 %436  ;;  %v600_v38 = vsub.s32 6, %v1793_v14  ;;  %v607_v42 = vsub.s32 7, %v1793_v14 }
  0xed   : > { %v426_v47 = vpop.permute.xlu0 %425  ;;  %v462_v48 = vmul.f32 %v437_v44, %v402_v36  ;;  %v572_v36 = vsub.s32 2, %v1793_v14 }
  0xee   : > { %478 = vperm.xlu1 %1406, %v459_v43   ;;  %v460_v54 = vmul.f32 %v426_v47, %v404_v52  ;;  %v601_v40 = vrot.slane %v1830_v27, %v600_v38  ;;  %v608_v43 = vrot.slane %v1830_v27, %v607_v42  ;;  %v720_v45 = vrot.slane %v409_v8, %v607_v42 }
  0xef   : > { %v573_v39 = vrot.slane %v1830_v27, %v572_v36  ;;  %v741_v44 = vrot.slane %v1842_v56, %v572_v36  ;;  %v636_v47 = vrot.slane %v1855_v4, %v1850_v0 }
  0xf0   : > { %v441_v49 = vpop.permute.xlu1 %440 }
  0xf1   : > { %v463_v50 = vmul.f32 %v441_v49, %v403_v41  ;;  %v430_v57 = vpop.permute.xlu0 %429  ;;  %v713_v41 = vrot.slane %v409_v8, %v600_v38  ;;  %v643_v49 = vrot.slane %v1855_v4, %v586_v19 }
  0xf2   : > { %487 = vperm.xlu1 %1406, %v462_v48   ;;  %v461_v61 = vmul.f32 %v430_v57, %v405_v59  ;;  %v748_v48 = vrot.slane %v1842_v56, %v1850_v0  ;;  %v776_v57 = vrot.slane %v1842_v56, %v607_v42  ;;  %v499_v0 = vand.u32 127, %v412_v13 }
  0xf3   : > { %490 = vperm.xlu0 %1407, %v463_v50   ;;  %v755_v50 = vrot.slane %v1842_v56, %v586_v19 }
  0xf4   : > { %v445_v55 = vpop.permute.xlu1 %444 }
  0xf5   : > { %v464_v58 = vmul.f32 %v445_v55, %v404_v52  ;;  %v657_v52 = vrot.slane %v1855_v4, %v600_v38  ;;  %v664_v55 = vrot.slane %v1855_v4, %v607_v42 }
  0xf6   : > { %481 = vperm.xlu1 %1406, %v460_v54   ;;  %v769_v54 = vrot.slane %v1842_v56, %v600_v38 }
  0xf7   : > { %493 = vperm.xlu0 %1407, %v464_v58  }
  0xf8   : > { %v449_v62 = vpop.permute.xlu1 %448 }
  0xf9   : > { %v465_v12 = vmul.f32 %v449_v62, %v405_v59  ;;  %v1907_v58 = vpop.permute.xlu0 %333 }
  0xfa   : > { %484 = vperm.xlu1 %1406, %v461_v61  }
  0xfb   : > { %736 = vbcast.lane.b32.xlu0 %v734_v60, 256 }
  0xfc   : > { %v329_v11 = vpop.permute.xlu1 %328 }
  0xfd   : > { %v346_v21 = vmul.f32 %v329_v11, %v1772_v3  ;;  %v347_v22 = vmul.f32 %v329_v11, %v1776_v5  ;;  %v671_v3 = vrot.slane %v409_v8, %v1796_v15  ;;  %v699_v5 = vrot.slane %v409_v8, %v586_v19  ;;  %v1909_v59 = vpop.permute.xlu0 %343 }
  0xfe   : > { %568 = vbcast.lane.b32.xlu1 %v566_v63, 256  ;;  %v685_v15 = vrot.slane %v409_v8, %v572_v36 }
  0xff   : > { %496 = vperm.xlu0 %1407, %v465_v12   ;;  %v504_v12 = vadd.s32 4294967288, %v499_v0 }
 0x100   : > { %v339_v20 = vpop.permute.xlu1 %338 }
 0x101   : > { %v350_v26 = vmul.f32 %v339_v20, %v1768_v1  ;;  %v351_v28 = vmul.f32 %v339_v20, %v1770_v2  ;;  %v678_v1 = vrot.slane %v409_v8, %v1803_v18  ;;  %v594_v2 = vrot.slane %v1830_v27, %v593_v31  ;;  %v1913_v61 = vpop.permute.xlu0 %361 }
 0x102   : > { %617 = vbcast.lane.b32.xlu1 %v615_v16, 256  ;;  %v629_v18 = vrot.slane %v1855_v4, %v572_v36  ;;  %v762_v27 = vrot.slane %v1842_v56, %v593_v31  ;;  %v511_v4 = vadd.s32 4294967280, %v499_v0  ;;  %v507_v19 = vsub.s32 %v504_v12, %v1793_v14 }
 0x103   : > { %694 = vbcast.lane.b32.xlu0 %v692_v17, 256  ;;  %v518_v17 = vadd.s32 4294967272, %v499_v0 }
 0x104   : > { %v357_v25 = vpop.permute.xlu1 %356  ;;  %v514_v20 = vsub.s32 %v511_v4, %v1793_v14 }
 0x105   : > { %v1871_v29 = vadd.f32 %v357_v25, %v346_v21  ;;  %v1873_v30 = vadd.f32 %v357_v25, %v347_v22  ;;  %v1919_v21 = vsub.s32 %v499_v0, %v1793_v14  ;;  %v521_v22 = vsub.s32 %v518_v17, %v1793_v14 }
 0x106   : > { %624 = vbcast.lane.b32.xlu1 %v622_v23, 256 }
 0x107   : > { %589 = vbcast.lane.b32.xlu0 %v587_v24, 256 }
 0x108   : > { %v367_v32 = vpop.permute.xlu1 %366 }
 0x109   : > { %v1877_v33 = vadd.f32 %v367_v32, %v350_v26  ;;  %v1879_v34 = vadd.f32 %v367_v32, %v351_v28 }
 0x10a   : > { %673 = vbcast.lane.b32.xlu1 %v671_v3, 256 }
 0x10b   : > { %701 = vbcast.lane.b32.xlu0 %v699_v5, 256 }
 0x10c   : > { %v1911_v60 = vpop.permute.xlu1 %561 }
 0x10e   : > { %680 = vbcast.lane.b32.xlu1 %v678_v1, 256 }
 0x10f   : > { %596 = vbcast.lane.b32.xlu0 %v594_v2, 256 }
 0x112   : > { %729 = vbcast.lane.b32.xlu1 %v727_v35, 256 }
 0x113   : > { %708 = vbcast.lane.b32.xlu0 %v706_v37, 256 }
 0x116   : > { %575 = vbcast.lane.b32.xlu1 %v573_v39, 256 }
 0x117   : > { %603 = vbcast.lane.b32.xlu0 %v601_v40, 256 }
 0x11a   : > { %631 = vbcast.lane.b32.xlu1 %v629_v18, 256 }
 0x11b   : > { %715 = vbcast.lane.b32.xlu0 %v713_v41, 256 }
 0x11e   : > { %687 = vbcast.lane.b32.xlu1 %v685_v15, 256 }
 0x11f   : > { %610 = vbcast.lane.b32.xlu0 %v608_v43, 256 }
 0x122   : > { %743 = vbcast.lane.b32.xlu1 %v741_v44, 256 }
 0x123   : > { %722 = vbcast.lane.b32.xlu0 %v720_v45, 256 }
 0x126   : > { %582 = vbcast.lane.b32.xlu1 %v580_v46, 256 }
 0x12a   : > { %638 = vbcast.lane.b32.xlu1 %v636_v47, 256 }
 0x12e   : > { %750 = vbcast.lane.b32.xlu1 %v748_v48, 256 }
 0x132   : > { %645 = vbcast.lane.b32.xlu1 %v643_v49, 256 }
 0x136   : > { %757 = vbcast.lane.b32.xlu1 %v755_v50, 256 }
 0x13a   : > { %652 = vbcast.lane.b32.xlu1 %v650_v51, 256 }
 0x13e   : > { %764 = vbcast.lane.b32.xlu1 %v762_v27, 256 }
 0x142   : > { %659 = vbcast.lane.b32.xlu1 %v657_v52, 256 }
 0x146   : > { %771 = vbcast.lane.b32.xlu1 %v769_v54, 256 }
 0x14a   : > { %666 = vbcast.lane.b32.xlu1 %v664_v55, 256 }
 0x14e   : > { %778 = vbcast.lane.b32.xlu1 %v776_v57, 256 }
 0x167   : > { %v476_v63 = vpop.permute.xlu0 %475 }
 0x168   : > { %v503_v3 = vrot.slane %v476_v63, %v1919_v21 }
 0x169   : > { %v479_v62 = vpop.permute.xlu1 %478 }
 0x16a   : > { %v508_v25 = vrot.slane %v479_v62, %v507_v19 }
 0x16c   : > { %v510_v1 = vsel %vm509_vm0, %v508_v25, %v503_v3 }
 0x16d   : > { %v488_v8 = vpop.permute.xlu1 %487 }
 0x16e   : > { %v491_v11 = vpop.permute.xlu0 %490  ;;  %v528_v5 = vrot.slane %v488_v8, %v1919_v21 }
 0x16f   : > { %v532_v13 = vrot.slane %v491_v11, %v507_v19 }
 0x171   : > { %v482_v16 = vpop.permute.xlu1 %481  ;;  %v533_v2 = vsel %vm509_vm0, %v532_v13, %v528_v5 }
 0x172   : > { %v494_v56 = vpop.permute.xlu0 %493  ;;  %v515_v26 = vrot.slane %v482_v16, %v514_v20 }
 0x173   : > { %v537_v28 = vrot.slane %v494_v56, %v514_v20 }
 0x174   : > { %v517_v14 = vsel %vm516_vm1, %v515_v26, %v510_v1 }
 0x175   : > { %v485_v23 = vpop.permute.xlu1 %484  ;;  %v538_v36 = vsel %vm516_vm1, %v537_v28, %v533_v2 }
 0x176   : > { %v737_v24 = vpop.permute.xlu0 %736  ;;  %v522_v31 = vrot.slane %v485_v23, %v521_v22 }
 0x178   : > { %v524_v37 = vsel %vm523_vm2, %v522_v31, %v517_v14 }
 0x179   : > { %v569_v18 = vpop.permute.xlu1 %568 }
 0x17a   : > { %v497_v32 = vpop.permute.xlu0 %496 }
 0x17b   : > { %v542_v35 = vrot.slane %v497_v32, %v521_v22 }
 0x17d   : > { %v543_v38 = vsel %vm523_vm2, %v542_v35, %v538_v36  ;;  %v618_v41 = vpop.permute.xlu1 %617 }
 0x17e   : > { %v545_v39 = vsel %vm544_vm3, %v543_v38, %v524_v37  ;;  %v695_v42 = vpop.permute.xlu0 %694 }
 0x17f   : > { %v548_v40 = vsel %vm547_vm4, %v545_v39, 0.0 }
 0x180   : > { %549 = vadd.xlane.f32.xlu0 %v548_v40 }
 0x181   : > { %v625_v15 = vpop.permute.xlu1 %624 }
 0x182   : > { %v590_v43 = vpop.permute.xlu0 %589 }
 0x185   : > { %v674_v44 = vpop.permute.xlu1 %673 }
 0x186   : > { %v702_v45 = vpop.permute.xlu0 %701 }
 0x189   : > { %v681_v46 = vpop.permute.xlu1 %680 }
 0x18a   : > { %v597_v47 = vpop.permute.xlu0 %596 }
 0x18d   : > { %v730_v48 = vpop.permute.xlu1 %729 }
 0x18e   : > { %v1925_v49 = vpop.permute.xlu0 %708 }
 0x191   : > { %v576_v50 = vpop.permute.xlu1 %575 }
 0x192   : > { %v1927_v51 = vpop.permute.xlu0 %603 }
 0x195   : > { %v632_v27 = vpop.permute.xlu1 %631 }
 0x196   : > { %v1929_v52 = vpop.permute.xlu0 %715 }
 0x199   : > { %v688_v54 = vpop.permute.xlu1 %687 }
 0x19a   : > { %v1931_v55 = vpop.permute.xlu0 %610 }
 0x19d   : > { %v744_v57 = vpop.permute.xlu1 %743 }
 0x19e   : > { %v1933_v62 = vpop.permute.xlu0 %722 }
 0x1a1   : > { %v583_v63 = vpop.permute.xlu1 %582 }
 0x1a5   : > { %v639_v4 = vpop.permute.xlu1 %638 }
 0x1a9   : > { %v751_v19 = vpop.permute.xlu1 %750 }
 0x1ad   : > { %v646_v23 = vpop.permute.xlu1 %645 }
 0x1b1   : > { %v758_v28 = vpop.permute.xlu1 %757 }
 0x1b5   : > { %v653_v31 = vpop.permute.xlu1 %652 }
 0x1b9   : > { %v765_v35 = vpop.permute.xlu1 %764 }
 0x1bd   : > { %v660_v38 = vpop.permute.xlu1 %659 }
 0x209   : > { %v550_v0 = vpop.xlane.xlu0 %549 }
 0x20a   : > { %v1935_v8 = vmax.f32 %v550_v0, 0.0 }
 0x20c   : > { %v812_v11 = vmul.f32 %v1911_v60, %v1935_v8  ;;  %v813_v12 = vmul.f32 %v569_v18, %v1935_v8  ;;  %v821_v16 = vmul.f32 %v625_v15, %v1935_v8  ;;  %v820_v17 = vmul.f32 %v618_v41, %v1935_v8  ;;  %v772_v41 = vpop.permute.xlu1 %771 }
 0x20d   : > { %v829_v56 = vmul.f32 %v681_v46, %v1935_v8  ;;  %v828_v20 = vmul.f32 %v674_v44, %v1935_v8  ;;  %v837_v60 = vmul.f32 %v737_v24, %v1935_v8  ;;  %v836_v22 = vmul.f32 %v730_v48, %v1935_v8 }
 0x20e   : > { %880 = vperm.xlu1 %1406, %v813_v12   ;;  %877 = vperm.xlu0 %1407, %v812_v11   ;;  %v822_v25 = vmul.f32 %v632_v27, %v1935_v8  ;;  %v814_v13 = vmul.f32 %v576_v50, %v1935_v8  ;;  %v838_v26 = vmul.f32 %v744_v57, %v1935_v8 }
 0x20f   : > { %v830_v3 = vmul.f32 %v688_v54, %v1935_v8  ;;  %v823_v24 = vmul.f32 %v639_v4, %v1935_v8  ;;  %v815_v5 = vmul.f32 %v583_v63, %v1935_v8  ;;  %v839_v32 = vmul.f32 %v751_v19, %v1935_v8 }
 0x210   : > { %v831_v1 = vmul.f32 %v695_v42, %v1935_v8  ;;  %v824_v2 = vmul.f32 %v646_v23, %v1935_v8  ;;  %v816_v14 = vmul.f32 %v590_v43, %v1935_v8  ;;  %v840_v36 = vmul.f32 %v758_v28, %v1935_v8  ;;  %v667_v44 = vpop.permute.xlu1 %666 }
 0x211   : > { %v832_v37 = vmul.f32 %v702_v45, %v1935_v8  ;;  %v825_v39 = vmul.f32 %v653_v31, %v1935_v8  ;;  %v817_v40 = vmul.f32 %v597_v47, %v1935_v8  ;;  %v841_v18 = vmul.f32 %v765_v35, %v1935_v8 }
 0x212   : > { %904 = vperm.xlu1 %1406, %v821_v16   ;;  %901 = vperm.xlu0 %1407, %v820_v17   ;;  %v833_v42 = vmul.f32 %v1925_v49, %v1935_v8  ;;  %v826_v15 = vmul.f32 %v660_v38, %v1935_v8  ;;  %v818_v43 = vmul.f32 %v1927_v51, %v1935_v8 }
 0x213   : > { %v842_v45 = vmul.f32 %v772_v41, %v1935_v8  ;;  %v834_v46 = vmul.f32 %v1929_v52, %v1935_v8  ;;  %v827_v47 = vmul.f32 %v667_v44, %v1935_v8  ;;  %v819_v48 = vmul.f32 %v1931_v55, %v1935_v8 }
 0x214   : > { %v779_v49 = vpop.permute.xlu1 %778  ;;  %v835_v51 = vmul.f32 %v1933_v62, %v1935_v8 }
 0x215   : > { %v843_v50 = vmul.f32 %v779_v49, %v1935_v8 }
 0x216   : > { %928 = vperm.xlu1 %1406, %v829_v56   ;;  %925 = vperm.xlu0 %1407, %v828_v20  }
 0x21a   : > { %952 = vperm.xlu1 %1406, %v837_v60   ;;  %949 = vperm.xlu0 %1407, %v836_v22  }
 0x21e   : > { %907 = vperm.xlu1 %1406, %v822_v25   ;;  %883 = vperm.xlu0 %1407, %v814_v13  }
 0x222   : > { %955 = vperm.xlu1 %1406, %v838_v26   ;;  %931 = vperm.xlu0 %1407, %v830_v3  }
 0x226   : > { %910 = vperm.xlu1 %1406, %v823_v24   ;;  %886 = vperm.xlu0 %1407, %v815_v5  }
 0x22a   : > { %958 = vperm.xlu1 %1406, %v839_v32   ;;  %934 = vperm.xlu0 %1407, %v831_v1  }
 0x22e   : > { %913 = vperm.xlu1 %1406, %v824_v2   ;;  %889 = vperm.xlu0 %1407, %v816_v14  }
 0x232   : > { %961 = vperm.xlu1 %1406, %v840_v36   ;;  %937 = vperm.xlu0 %1407, %v832_v37  }
 0x236   : > { %916 = vperm.xlu1 %1406, %v825_v39   ;;  %892 = vperm.xlu0 %1407, %v817_v40  }
 0x23a   : > { %964 = vperm.xlu1 %1406, %v841_v18   ;;  %940 = vperm.xlu0 %1407, %v833_v42  }
 0x23e   : > { %919 = vperm.xlu1 %1406, %v826_v15   ;;  %895 = vperm.xlu0 %1407, %v818_v43  }
 0x242   : > { %967 = vperm.xlu1 %1406, %v842_v45   ;;  %943 = vperm.xlu0 %1407, %v834_v46  }
 0x246   : > { %922 = vperm.xlu1 %1406, %v827_v47   ;;  %898 = vperm.xlu0 %1407, %v819_v48  }
 0x24a   : > { %970 = vperm.xlu1 %1406, %v843_v50   ;;  %946 = vperm.xlu0 %1407, %v835_v51  }
 0x289   : > { %v881_v27 = vpop.permute.xlu1 %880  ;;  %v878_v54 = vpop.permute.xlu0 %877 }
 0x28a   : > { %v979_v3 = vrot.slane %v881_v27, %v1919_v21  ;;  %v975_v24 = vrot.slane %v878_v54, %v1919_v21 }
 0x28c   : > { %v1100_v18 = vsel %vm544_vm3, %v979_v3, %v975_v24 }
 0x28d   : > { %v905_v52 = vpop.permute.xlu1 %904  ;;  %v902_v57 = vpop.permute.xlu0 %901 }
 0x28e   : > { %v1011_v5 = vrot.slane %v905_v52, %v1919_v21  ;;  %v1007_v31 = vrot.slane %v902_v57, %v1919_v21 }
 0x290   : > { %v1113_v41 = vsel %vm544_vm3, %v1011_v5, %v1007_v31 }
 0x291   : > { %v929_v63 = vpop.permute.xlu1 %928  ;;  %v926_v0 = vpop.permute.xlu0 %925 }
 0x292   : > { %v1043_v1 = vrot.slane %v929_v63, %v1919_v21  ;;  %v1039_v2 = vrot.slane %v926_v0, %v1919_v21 }
 0x294   : > { %v1120_v44 = vsel %vm544_vm3, %v1043_v1, %v1039_v2 }
 0x295   : > { %v953_v11 = vpop.permute.xlu1 %952  ;;  %v950_v12 = vpop.permute.xlu0 %949 }
 0x296   : > { %v1075_v35 = vrot.slane %v953_v11, %v1919_v21  ;;  %v1071_v14 = vrot.slane %v950_v12, %v1919_v21 }
 0x298   : > { %v1127_v45 = vsel %vm544_vm3, %v1075_v35, %v1071_v14 }
 0x299   : > { %v908_v4 = vpop.permute.xlu1 %907  ;;  %v884_v55 = vpop.permute.xlu0 %883 }
 0x29a   : > { %v1015_v37 = vrot.slane %v908_v4, %v1919_v21  ;;  %v983_v38 = vrot.slane %v884_v55, %v1919_v21 }
 0x29c   : > { %v1114_v49 = vsel %vm1101_vm5, %v1015_v37, %v1113_v41  ;;  %v1102_v50 = vsel %vm1101_vm5, %v983_v38, %v1100_v18 }
 0x29d   : > { %v1975_v16 = vpop.permute.xlu1 %955  ;;  %v932_v17 = vpop.permute.xlu0 %931 }
 0x29e   : > { %v1047_v39 = vrot.slane %v932_v17, %v1919_v21  ;;  %v1079_v54 = vrot.slane %v1975_v16, %v1919_v21 }
 0x2a0   : > { %v1121_v52 = vsel %vm1101_vm5, %v1047_v39, %v1120_v44  ;;  %v1128_v2 = vsel %vm1101_vm5, %v1079_v54, %v1127_v45 }
 0x2a1   : > { %v911_v56 = vpop.permute.xlu1 %910  ;;  %v887_v19 = vpop.permute.xlu0 %886 }
 0x2a2   : > { %v1019_v40 = vrot.slane %v911_v56, %v1919_v21  ;;  %v987_v42 = vrot.slane %v887_v19, %v1919_v21 }
 0x2a4   : > { %v1115_v57 = vsel %vm1103_vm6, %v1019_v40, %v1114_v49  ;;  %v1104_v0 = vsel %vm1103_vm6, %v987_v42, %v1102_v50 }
 0x2a5   : > { %v1977_v20 = vpop.permute.xlu1 %958  ;;  %v1979_v62 = vpop.permute.xlu0 %934 }
 0x2a6   : > { %v1083_v11 = vrot.slane %v1977_v20, %v1919_v21  ;;  %v1051_v12 = vrot.slane %v1979_v62, %v1919_v21 }
 0x2a8   : > { %v1122_v5 = vsel %vm1103_vm6, %v1051_v12, %v1121_v52  ;;  %v1129_v37 = vsel %vm1103_vm6, %v1083_v11, %v1128_v2  ;;  %v1187_v2 = vld [vmem:[%s1762_s7 + $0x20] sm:$0xff] }
 0x2a9   : > { %v914_v8 = vpop.permute.xlu1 %913  ;;  %v890_v60 = vpop.permute.xlu0 %889 }
 0x2aa   : > { %v1023_v15 = vrot.slane %v914_v8, %v1919_v21  ;;  %v991_v46 = vrot.slane %v890_v60, %v1919_v21 }
 0x2ac   : > { %v1116_v4 = vsel %vm1105_vm7, %v1023_v15, %v1115_v57  ;;  %v1106_v17 = vsel %vm1105_vm7, %v991_v46, %v1104_v0 }
 0x2ad   : > { %v1981_v22 = vpop.permute.xlu1 %961  ;;  %v1983_v23 = vpop.permute.xlu0 %937 }
 0x2ae   : > { %v1055_v16 = vrot.slane %v1983_v23, %v1919_v21 }
 0x2b1   : > { %v917_v25 = vpop.permute.xlu1 %916  ;;  %v893_v13 = vpop.permute.xlu0 %892 }
 0x2b2   : > { %v1027_v47 = vrot.slane %v917_v25, %v1919_v21  ;;  %v995_v51 = vrot.slane %v893_v13, %v1919_v21  ;;  %v1087_v13 = vrot.slane %v1981_v22, %v1919_v21  ;;  %v1123_v22 = vsel %vm1105_vm7, %v1055_v16, %v1122_v5 }
 0x2b3   : > { %v352_v5 = vmul.f32 %v1909_v59, %v1778_v6 }
 0x2b4   : > { %v1117_v56 = vsel %vm1107_vm8, %v1027_v47, %v1116_v4  ;;  %v1108_v60 = vsel %vm1107_vm8, %v995_v51, %v1106_v17  ;;  %v1130_v40 = vsel %vm1105_vm7, %v1087_v13, %v1129_v37  ;;  %v348_v4 = vmul.f32 %v1907_v58, %v1784_v9  ;;  %v1184_v13 = vld [vmem:[%s1762_s7 + $0x8] sm:$0xff] }
 0x2b5   : > { %v1985_v26 = vpop.permute.xlu1 %964  ;;  %v1987_v28 = vpop.permute.xlu0 %940 }
 0x2b6   : > { %v1059_v20 = vrot.slane %v1987_v28, %v1919_v21  ;;  %v1091_v31 = vrot.slane %v1985_v26, %v1919_v21  ;;  %v376_v17 = vadd.f32 %v1913_v61, %v348_v4 }
 0x2b8   : > { %v1124_v38 = vsel %vm1107_vm8, %v1059_v20, %v1123_v22  ;;  %v1131_v41 = vsel %vm1107_vm8, %v1091_v31, %v1130_v40  ;;  %v353_v31 = vmul.f32 %v1909_v59, %v1780_v7 }
 0x2b9   : > { %v920_v32 = vpop.permute.xlu1 %919  ;;  %v896_v36 = vpop.permute.xlu0 %895 }
 0x2ba   : > { %v1031_v27 = vrot.slane %v920_v32, %v1919_v21  ;;  %v999_v63 = vrot.slane %v896_v36, %v1919_v21 }
 0x2bc   : > { %v1118_v25 = vsel %vm1109_vm9, %v1031_v27, %v1117_v56  ;;  %v1110_v24 = vsel %vm1109_vm9, %v999_v63, %v1108_v60 }
 0x2bd   : > { %v968_v43 = vpop.permute.xlu1 %967  ;;  %v944_v48 = vpop.permute.xlu0 %943 }
 0x2be   : > { %v1063_v3 = vrot.slane %v944_v48, %v1919_v21  ;;  %v1095_v35 = vrot.slane %v968_v43, %v1919_v21 }
 0x2c0   : > { %v1125_v18 = vsel %vm1109_vm9, %v1063_v3, %v1124_v38  ;;  %v1132_v43 = vsel %vm1109_vm9, %v1095_v35, %v1131_v41  ;;  %v1189_v38 = vld [vmem:[%s1762_s7 + $0x30] sm:$0xff] }
 0x2c1   : > { %v923_v55 = vpop.permute.xlu1 %922  ;;  %v899_v8 = vpop.permute.xlu0 %898 }
 0x2c2   : > { %v1035_v19 = vrot.slane %v923_v55, %v1919_v21  ;;  %v1003_v62 = vrot.slane %v899_v8, %v1919_v21  ;;  %v349_v55 = vmul.f32 %v1907_v58, %v1786_v10  ;;  %v1186_v8 = vld [vmem:[%s1762_s7 + $0x18] sm:$0xff] }
 0x2c4   : > { %v1119_v23 = vsel %vm1111_vm10, %v1035_v19, %v1118_v25  ;;  %v1112_v1 = vsel %vm1111_vm10, %v1003_v62, %v1110_v24  ;;  %v377_v16 = vadd.f32 %v1913_v61, %v349_v55  ;;  %v1185_v19 = vld [vmem:[%s1762_s7 + $0x10] sm:$0xff]  ;;  %v1183_v25 = vld [vmem:[%s1762_s7] sm:$0xff] }
 0x2c5   : > { %v971_v32 = vpop.permute.xlu1 %970  ;;  %v1142_v28 = vsel %vm1138_vm11, %v1119_v23, 0.0  ;;  %v947_v14 = vpop.permute.xlu0 %946  ;;  %v1139_v36 = vsel %vm1138_vm11, %v1112_v1, 0.0 }
 0x2c6   : > { %1143 = vadd.xlane.f32.xlu1 %v1142_v28  ;;  %v1099_v26 = vrot.slane %v971_v32, %v1919_v21  ;;  %v1067_v39 = vrot.slane %v947_v14, %v1919_v21  ;;  %1140 = vadd.xlane.f32.xlu0 %v1139_v36 }
 0x2c8   : > { %v1126_v42 = vsel %vm1111_vm10, %v1067_v39, %v1125_v18  ;;  %v1133_v44 = vsel %vm1111_vm10, %v1099_v26, %v1132_v43  ;;  %v1190_v26 = vld [vmem:[%s1762_s7 + $0x38] sm:$0xff] }
 0x2c9   : > { %v1145_v15 = vsel %vm1138_vm11, %v1126_v42, 0.0  ;;  %v1148_v45 = vsel %vm1138_vm11, %v1133_v44, 0.0 }
 0x2ca   : > { %1146 = vadd.xlane.f32.xlu0 %v1145_v15 }
 0x2ce   : > { %1149 = vadd.xlane.f32.xlu0 %v1148_v45 }
 0x2d7   : > { %371 = vperm.xlu1 %1406, %v1837_v53  }
 0x34f   : > { %v1144_v21 = vpop.xlane.xlu1 %1143  ;;  %v1141_v47 = vpop.xlane.xlu0 %1140 }
 0x350   : > { %v1339_v46 = vmul.f32 -1.442695, %v1144_v21  ;;  %v1338_v48 = vmul.f32 -1.442695, %v1141_v47 }
 0x352   : > { %1408 = vpow2.f32 %v1339_v46 }
 0x353   : > { %1410 = vpow2.f32 %v1338_v48  ;;  %v1147_v49 = vpop.xlane.xlu0 %1146  ;;  %v372_v1 = vpop.permute.xlu1 %371 }
 0x354   : > { %v1340_v50 = vmul.f32 -1.442695, %v1147_v49  ;;  %v380_v6 = vadd.f32 %v372_v1, %v352_v5  ;;  %v381_v7 = vadd.f32 %v372_v1, %v353_v31 }
 0x356   : > { %1412 = vpow2.f32 %v1340_v50 }
 0x357   : > { %v1150_v51 = vpop.xlane.xlu0 %1149 }
 0x358   : > { %v1341_v27 = vmul.f32 -1.442695, %v1150_v51 }
 0x35a   : > { %1414 = vpow2.f32 %v1341_v27 }
 0x35f   : > { %v1409_v54 = vpop.eup %1408 }
 0x360   : > { %v1411_v52 = vpop.eup %1410  ;;  %v1164_v57 = vadd.f32 1.0, %v1409_v54 }
 0x361   : > { %v1163_v63 = vadd.f32 1.0, %v1411_v52 }
 0x362   : > { %1416 = vrcp.f32 %v1164_v57 }
 0x363   : > { %1418 = vrcp.f32 %v1163_v63  ;;  %v1413_v53 = vpop.eup %1412 }
 0x364   : > { %v1165_v0 = vadd.f32 1.0, %v1413_v53 }
 0x366   : > { %1420 = vrcp.f32 %v1165_v0 }
 0x367   : > { %v1415_v11 = vpop.eup %1414 }
 0x368   : > { %v1166_v12 = vadd.f32 1.0, %v1415_v11 }
 0x36a   : > { %1422 = vrcp.f32 %v1166_v12 }
 0x36f   : > { %v1417_v56 = vpop.eup %1416 }
 0x370   : > { %v1419_v60 = vpop.eup %1418  ;;  %v1177_v20 = vmul.f32 %v1417_v56, %v376_v17  ;;  %v1178_v62 = vmul.f32 %v1417_v56, %v377_v16 }
 0x371   : > { %v1175_v9 = vmul.f32 %v1419_v60, %v1871_v29  ;;  %v1176_v3 = vmul.f32 %v1419_v60, %v1873_v30  ;;  %v1188_v29 = vld [vmem:[%s1762_s7 + $0x28] sm:$0xff]  ;;  %s1480_s7 = scalar_lea.vmem %s2090_s12, 1024 }
 0x372   : > { %v1193_v10 = vadd.f32 %v1185_v19, %v1177_v20  ;;  %v1194_v58 = vadd.f32 %v1186_v8, %v1178_v62  ;;  %p1481_p13 = scmp.ne.s32.totalorder %s2090_s12, %s1480_s7  ;;  %p1488_p0 = scmp.lt.s32.totalorder %s1486_s28, %s1480_s7 }
 0x373   : > { %v1191_v23 = vadd.f32 %v1183_v25, %v1175_v9  ;;  %v1192_v24 = vadd.f32 %v1184_v13, %v1176_v3  ;;  %v1421_v61 = vpop.eup %1420 }
 0x374   : > { %v1201_v32 = vmax.f32 %v1193_v10, 0.0  ;;  %v1202_v28 = vmax.f32 %v1194_v58, 0.0  ;;  %v1179_v35 = vmul.f32 %v1421_v61, %v1877_v33  ;;  %v1180_v14 = vmul.f32 %v1421_v61, %v1879_v34  ;;  %p1482_p12 = pnand %p1481_p13, %p2155_p1  ;;  %p1489_p2 = por %p1488_p0, %p1487_p10 }
 0x375   : > { %v1199_v30 = vmax.f32 %v1191_v23, 0.0  ;;  %v1200_v22 = vmax.f32 %v1192_v24, 0.0 }
 0x376   : > { %1209 = vst [vmem:[%s309_s8 + $0x10] sm:$0xff] %v1201_v32  ;;  %1210 = vst [vmem:[%s309_s8 + $0x18] sm:$0xff] %v1202_v28  ;;  %v1195_v59 = vadd.f32 %v1187_v2, %v1179_v35  ;;  %v1196_v36 = vadd.f32 %v1188_v29, %v1180_v14  ;;  %p1483_p7 = pneg %p1482_p12 }
 0x377   : > { %1207 = vst [vmem:[%s309_s8] sm:$0xff] %v1199_v30  ;;  %1208 = vst [vmem:[%s309_s8 + $0x8] sm:$0xff] %v1200_v22  ;;  %v1423_v37 = vpop.eup %1422 }
 0x378   : > { %v1203_v39 = vmax.f32 %v1195_v59, 0.0  ;;  %v1204_v40 = vmax.f32 %v1196_v36, 0.0  ;;  %v1181_v18 = vmul.f32 %v1423_v37, %v380_v6  ;;  %v1182_v33 = vmul.f32 %v1423_v37, %v381_v7  ;;  %p1490_p4 = pnand %p1489_p2, %p1483_p7 }
 0x37a   : > { %1211 = vst [vmem:[%s309_s8 + $0x20] sm:$0xff] %v1203_v39  ;;  %1212 = vst [vmem:[%s309_s8 + $0x28] sm:$0xff] %v1204_v40  ;;  %v1197_v34 = vadd.f32 %v1189_v38, %v1181_v18  ;;  %v1198_v41 = vadd.f32 %v1190_v26, %v1182_v33 }
 0x37c   : > { %v1205_v42 = vmax.f32 %v1197_v34, 0.0  ;;  %v1206_v15 = vmax.f32 %v1198_v41, 0.0 }
 0x37e   : > { %1213 = vst [vmem:[%s309_s8 + $0x30] sm:$0xff] %v1205_v42  ;;  %1214 = vst [vmem:[%s309_s8 + $0x38] sm:$0xff] %v1206_v15 }
 0x37f   : > { %1493 = shalt.err (!%p1490_p4)
}
 0x380   : > { %s1494_s29 = scalar_lea.hbm %s2088_s15, 1024  ;;  %s1498_s19 = scalar_lea.hbm %s2139_s6, 2048 }
 0x381   : > { %p1495_p9 = scmp.ne.s32.totalorder %s2088_s15, %s1494_s29  ;;  %p1499_p5 = scmp.lt.s32.totalorder %s2088_s15, %s2139_s6 }
 0x382   : > { %p1500_p8 = scmp.lt.s32.totalorder %s1498_s19, %s1494_s29 }
 0x383   : > { %p1496_p11 = pnand %p1495_p9, %p2155_p1 }
 0x384   : > { %p1501_p6 = por %p1500_p8, %p1499_p5 }
 0x385   : > { %p1497_p3 = pneg %p1496_p11 }
 0x387   : > { %p1502_p13 = pnand %p1501_p6, %p1497_p3 }
 0x389   : > { %1505 = shalt.err (!%p1502_p13)
}
 0x38a   : > { %s1556_s13 = smov 256   ;;  %s1557_s17 = smov 16  }
 0x38b   : > { %1354 = dma.vmem_to_hbm [thread:$0]  (%p2155_p1), %s2090_s12, 1024, %s2088_s15, %s1216_s25, %s1556_s13, %s1556_s13, %s1557_s17  }
 0x38c PF: > { %s1244_s16 = sand.u32 1, %s1536_s21   ;;  %p2156_p12 = scmp.ne.s32.totalorder %s2148_s10, 0 }
 0x38d   : > { %p2157_p7 = scmp.ge.s32.totalorder %s1548_s24, 2  ;;  %s1245_s7 = scalar_lea.sflag [#allocation4], %s1244_s16 }
 0x38f   : > { %p1364_p10 = pnand %p2157_p7, %p2156_p12 }
 0x391   : > { %p1365_p0 = pneg %p1364_p10 }
 0x393   : > { %1531 = dma.done.wait (%p1365_p0), %s1245_s7, 1024  }
 0x394   : > { %1533 = vsyncadd (%p1365_p0), %s1245_s7, 4294966272  ;;  %p22_p2 = scmp.ge.s32.totalorder %s1618_s27, 4   ;;  %s2158_s21 = smov %s1540_s22 }
 0x395   : > { %s2159_s22 = smov %s1544_s23  ;;  %s2160_s23 = smov %s1630_s30 }
 0x396   : > { %s2161_s24 = smov %s1618_s27  ;;  %24 = sbr.rel (!%p22_p2) target bundleno = 9 (0x9), region = 102 }
 0x39b   :  { %1250 = vsyncpa [#allocation3], 1 }
 0x39c   :  { %1252 = vsyncpa [#allocation3 + $0x1], 1 }
 0x39d   :  { %1253 = vsyncpa [#allocation6], 1 }
 0x39e   :  { %1255 = vsyncpa [#allocation6 + $0x1], 1 }
 0x39f   :  { %1256 = vsyncpa [#allocation4], 1 }
 0x3a0   :  { %1258 = vsyncpa [#allocation4 + $0x1], 1 }

</bundles_post_ra>
